<compile_context>
chip_gen: v5e
topology: v5e:2x2
jax: 0.10.0
libtpu: 0.0.40
codegen_flags: <defaults>
</compile_context>

<pallas_src>
import functools
import math

import jax
import jax.numpy as jnp
from jax import lax
from jax.experimental import pallas as pl
from jax.experimental.pallas import tpu as pltpu

# ---- model config (small, consistent with the PyTorch module) ----
VOCAB = 64
EMB = 32
HID = 64
LAYERS = 2
HEADS = 4
KV_HEADS = 2
EPS = 1e-5
MAX_SEQ = 8
WINDOW = 4
HEAD_DIM = EMB // HEADS          # 8
KV_DIM = KV_HEADS * HEAD_DIM     # 16
REPEAT = HEADS // KV_HEADS       # 2

QKV = EMB + 2 * KV_DIM           # 64  (q | k | v)
OFF_QS = QKV                     # 64  start of swapped-q columns
OFF_KS = QKV + EMB               # 96  start of swapped-k columns
QKV_EXT = 128                    # padded extended in_proj width (112 -> 128)
GU = 2 * HID                     # 128 (gate | up)
OUT_PAD = 128                    # lane-dense logits width (>= VOCAB)


# ---------------- fused Pallas kernel ----------------
def _mistral_kernel(eps,
                    x_ref, wqkv_ref, o_proj_ref, gate_up_ref, down_ref,
                    norms_ref, lm_head_ref, rope_ref, bias_ref,
                    out_ref, s_scratch):
    # x_ref:      (N, E)   flattened-batch activations, N = B*S
    # wqkv_ref:   (L, E, 128)  [W_q | W_k | W_v | W_q·P | W_k·P | 0]
    # gate_up_ref:(L, E, 128)  [W_gate | W_up]
    # norms_ref:  (2L+1, 1, E) [attn0, ffn0, attn1, ffn1, final]
    # rope_ref:   (N, 128) elementwise RoPE multiplier (scale folded into q cols)
    # bias_ref:   (N, N)   additive mask bias (0 / -1e30), batch block-diagonal
    # out_ref:    (N, 128) lane-dense padded logits
    # s_scratch:  (HEADS*N, N) stacked per-head attention scores
    N = x_ref.shape[0]
    x = x_ref[...].astype(jnp.float32)
    rope = rope_ref[...]
    bias = bias_ref[...]

    def rms(v, w):
        ms = jnp.mean(v * v, axis=-1, keepdims=True)
        return (v * lax.rsqrt(ms + eps)) * w          # w broadcasts from (1, E)

    for l in range(LAYERS):
        # ---- attention ----
        h_in = rms(x, norms_ref[2 * l])                                  # (N, E)
        qkv = jnp.dot(h_in, wqkv_ref[l],
                      preferred_element_type=jnp.float32)                # (N, 128)
        # RoPE: pair (a, b) -> (a*c - b*s, a*s + b*c); swapped columns were
        # produced by the folded permutation, signs/scale live in `rope`.
        rot = qkv * rope
        q = rot[:, :EMB] + rot[:, OFF_QS:OFF_QS + EMB]                   # (N, E)
        k = rot[:, EMB:EMB + KV_DIM] + rot[:, OFF_KS:OFF_KS + KV_DIM]    # (N, KV)
        v = qkv[:, EMB + KV_DIM:QKV]                                     # (N, KV)

        # Stack all heads' score tiles into scratch (sublane-aligned offsets),
        # with the additive mask bias applied at store time.
        for h in range(HEADS):
            g = h // REPEAT                       # GQA: query head -> kv head
            qh = q[:, h * HEAD_DIM:(h + 1) * HEAD_DIM]
            kg = k[:, g * HEAD_DIM:(g + 1) * HEAD_DIM]
            s_scratch[h * N:(h + 1) * N, :] = lax.dot_general(
                qh, kg, (((1,), (1,)), ((), ())),
                preferred_element_type=jnp.float32) + bias

        # One softmax over all heads at once.
        s_all = s_scratch[...]                                           # (4N, N)
        m = jnp.max(s_all, axis=-1, keepdims=True)
        p = jnp.exp(s_all - m)
        lsum = jnp.sum(p, axis=-1, keepdims=True)
        pn = p * pl.reciprocal(lsum, approx=True)

        # p @ V per head with o_proj folded into the epilogue:
        # concat_h(o_h) @ W_o == sum_h o_h @ W_o[rows_h].
        w_o = o_proj_ref[l]                                              # (E, E)
        attn_out = jnp.zeros((N, EMB), jnp.float32)
        for h in range(HEADS):
            g = h // REPEAT
            p_h = pn[h * N:(h + 1) * N, :]                               # (N, N)
            vg = v[:, g * HEAD_DIM:(g + 1) * HEAD_DIM]                   # (N, Dh)
            o_h = jnp.dot(p_h, vg, preferred_element_type=jnp.float32)   # (N, Dh)
            attn_out = attn_out + jnp.dot(
                o_h, w_o[h * HEAD_DIM:(h + 1) * HEAD_DIM, :],
                preferred_element_type=jnp.float32)
        x = x + attn_out

        # ---- feed forward (gate|up fused into one 128-lane matmul) ----
        hn = rms(x, norms_ref[2 * l + 1])
        gu = jnp.dot(hn, gate_up_ref[l], preferred_element_type=jnp.float32)
        g_ = gu[:, :HID]
        u_ = gu[:, HID:]
        ff = (g_ * jax.nn.sigmoid(g_)) * u_                              # silu*up
        x = x + jnp.dot(ff, down_ref[l], preferred_element_type=jnp.float32)

    # ---- final norm + (zero-padded, lane-dense) lm head ----
    xn = rms(x, norms_ref[2 * LAYERS])
    out_ref[...] = jnp.dot(xn, lm_head_ref[...],
                           preferred_element_type=jnp.float32).astype(out_ref.dtype)


# ---------------- host-side operand preparation ----------------
def rope_mul_table(B, S, scale):
    """(B*S, 128) elementwise multiplier matching the extended qkv layout.

    cols  0:32  cos (interleaved, tiled over heads) * scale   (q)
    cols 32:48  cos tiled over kv heads                       (k)
    cols 48:64  ones                                          (v passthrough)
    cols 64:96  signed sin * scale                            (q swapped)
    cols 96:112 signed sin                                    (k swapped)
    cols 112:128 zeros                                        (padding)
    """
    freqs = 1.0 / (10000.0 ** (jnp.arange(0, HEAD_DIM, 2, dtype=jnp.float32) / HEAD_DIM))
    t = jnp.arange(S, dtype=jnp.float32)
    ang = jnp.outer(t, freqs)                                # (S, Dh//2)
    cos = jnp.cos(ang)
    sin = jnp.sin(ang)
    cos_i = jnp.repeat(cos, 2, axis=-1)                      # [c0,c0,c1,c1,...]
    sin_i = jnp.stack([-sin, sin], axis=-1).reshape(S, HEAD_DIM)  # [-s0,s0,...]
    table = jnp.concatenate([
        jnp.tile(cos_i, (1, HEADS)) * scale,                 # q cos (scaled)
        jnp.tile(cos_i, (1, KV_HEADS)),                      # k cos
        jnp.ones((S, KV_DIM), jnp.float32),                  # v
        jnp.tile(sin_i, (1, HEADS)) * scale,                 # q sin (scaled)
        jnp.tile(sin_i, (1, KV_HEADS)),                      # k sin
        jnp.zeros((S, QKV_EXT - OFF_KS - KV_DIM), jnp.float32),
    ], axis=-1)                                              # (S, 128)
    return jnp.tile(table, (B, 1))                           # (B*S, 128)


def mask_bias(B, S, window):
    """(B*S, B*S) additive bias: 0 where attended, -1e30 otherwise."""
    n = B * S
    qi = jnp.arange(n)[:, None]
    ki = jnp.arange(n)[None, :]
    # flex_attention mask_mod semantics: causal AND (q_idx - kv_idx <= window),
    # block-diagonal across the flattened batch.
    # TODO(synk): the FlashSelfAttention fallback branch uses window_size-1; we
    # implement the flex_attention (CUDA) branch semantics here.
    allowed = ((qi // S) == (ki // S)) & (qi >= ki) & ((qi - ki) <= window)
    return jnp.where(allowed, 0.0, -1e30).astype(jnp.float32)


def _cost_estimate(N, operands):
    flops_layer = (2 * N * EMB * QKV_EXT                 # extended in_proj
                   + HEADS * 4 * N * N * HEAD_DIM        # qk^T + pV
                   + 2 * N * EMB * EMB                   # folded o_proj
                   + 2 * N * EMB * GU                    # gate|up
                   + 2 * N * HID * EMB)                  # down
    flops = LAYERS * flops_layer + 2 * N * EMB * OUT_PAD
    trans = LAYERS * (HEADS * N * N + N * HID + HEADS * N + 2 * N) + N
    bytes_accessed = sum(int(a.size) * int(a.dtype.itemsize) for a in operands)
    bytes_accessed += N * OUT_PAD * 4
    return pl.CostEstimate(flops=int(flops), transcendentals=int(trans),
                           bytes_accessed=int(bytes_accessed))


def mistral_forward(params, idx):
    B, S = idx.shape
    N = B * S
    # Token embedding gather stays in XLA (cheap; overlaps with the kernel).
    x = jnp.take(params["tok_embedding"], idx, axis=0).reshape(N, EMB)

    scale = 1.0 / math.sqrt(HEAD_DIM)
    rope = rope_mul_table(B, S, scale)                   # (N, 128)
    bias = mask_bias(B, S, WINDOW)                       # (N, N)

    # Fold the RoPE pair-swap permutations into in_proj (extra swapped cols).
    w_in = params["in_proj"]                             # (L, E, QKV)
    w_q = w_in[:, :, :EMB]
    w_k = w_in[:, :, EMB:EMB + KV_DIM]
    w_qs = w_q[:, :, jnp.arange(EMB) ^ 1]                # columns j <-> j^1
    w_ks = w_k[:, :, jnp.arange(KV_DIM) ^ 1]
    pad = jnp.zeros((LAYERS, EMB, QKV_EXT - OFF_KS - KV_DIM), jnp.float32)
    w_qkv_ext = jnp.concatenate([w_in, w_qs, w_ks, pad], axis=-1)  # (L, E, 128)

    gate_up = jnp.concatenate([params["gate"], params["up"]], axis=-1)  # (L, E, 128)

    norm_rows = []
    for l in range(LAYERS):
        norm_rows.append(params["attn_norm"][l])
        norm_rows.append(params["ffn_norm"][l])
    norm_rows.append(params["norm"])
    norms = jnp.stack(norm_rows, axis=0)                 # (2L+1, 1, E)

    lm_head = jnp.pad(params["lm_head"], ((0, 0), (0, OUT_PAD - VOCAB)))  # (E, 128)

    operands = (x, w_qkv_ext, params["o_proj"], gate_up, params["down"],
                norms, lm_head, rope, bias)

    def full_spec(a):
        nd = a.ndim
        return pl.BlockSpec(a.shape, lambda i, _nd=nd: (0,) * _nd)

    out_flat = pl.pallas_call(
        functools.partial(_mistral_kernel, EPS),
        out_shape=jax.ShapeDtypeStruct((N, OUT_PAD), jnp.float32),
        grid=(1,),                                       # whole batch, one step
        in_specs=[full_spec(a) for a in operands],
        out_specs=pl.BlockSpec((N, OUT_PAD), lambda i: (0, 0)),
        scratch_shapes=[pltpu.VMEM((HEADS * N, N), jnp.float32)],
        compiler_params=pltpu.CompilerParams(dimension_semantics=("arbitrary",)),
        cost_estimate=_cost_estimate(N, operands),
    )(*operands)
    return out_flat[:, :VOCAB].reshape(B, S, VOCAB)


# ---------------- pure-JAX reference (numerical sanity check) ----------------
def reference_forward(params, idx):
    x = jnp.take(params["tok_embedding"], idx, axis=0)
    B, S, _ = x.shape

    freqs = 1.0 / (10000.0 ** (jnp.arange(0, HEAD_DIM, 2, dtype=jnp.float32) / HEAD_DIM))
    ang = jnp.outer(jnp.arange(S, dtype=jnp.float32), freqs)
    cos, sin = jnp.cos(ang), jnp.sin(ang)                # (S, Dh//2)

    def rms(v, w):
        ms = jnp.mean(v * v, axis=-1, keepdims=True)
        return (v * lax.rsqrt(ms + EPS)) * w.reshape(-1)

    def rope(t):  # t: (B, nH, S, Dh) -- complex pair rotation
        tr = t.reshape(*t.shape[:-1], -1, 2)
        a, b = tr[..., 0], tr[..., 1]
        c, s_ = cos[None, None], sin[None, None]
        return jnp.stack([a * c - b * s_, a * s_ + b * c], axis=-1).reshape(t.shape)

    qi = jnp.arange(S)[:, None]
    ki = jnp.arange(S)[None, :]
    mask = (qi >= ki) & ((qi - ki) <= WINDOW)

    for l in range(LAYERS):
        hn = rms(x, params["attn_norm"][l])
        qkv = hn @ params["in_proj"][l]
        q = qkv[..., :EMB].reshape(B, S, HEADS, HEAD_DIM).transpose(0, 2, 1, 3)
        k = qkv[..., EMB:EMB + KV_DIM].reshape(B, S, KV_HEADS, HEAD_DIM).transpose(0, 2, 1, 3)
        v = qkv[..., EMB + KV_DIM:].reshape(B, S, KV_HEADS, HEAD_DIM).transpose(0, 2, 1, 3)
        q, k = rope(q), rope(k)
        k = jnp.repeat(k, REPEAT, axis=1)
        v = jnp.repeat(v, REPEAT, axis=1)
        s_ = jnp.einsum("bhqd,bhkd->bhqk", q, k) / math.sqrt(HEAD_DIM)
        s_ = jnp.where(mask, s_, -1e30)
        p = jax.nn.softmax(s_, axis=-1)
        o = jnp.einsum("bhqk,bhkd->bhqd", p, v)
        o = o.transpose(0, 2, 1, 3).reshape(B, S, EMB)
        x = x + o @ params["o_proj"][l]
        hn = rms(x, params["ffn_norm"][l])
        g = hn @ params["gate"][l]
        u = hn @ params["up"][l]
        x = x + (jax.nn.silu(g) * u) @ params["down"][l]
    return rms(x, params["norm"]) @ params["lm_head"]


# ---------------- deterministic parameter init ----------------
def init_params(key):
    keys = jax.random.split(key, 3 + LAYERS)

    def lin(k, fan_in, fan_out):
        bound = 1.0 / math.sqrt(fan_in)
        return jax.random.uniform(k, (fan_in, fan_out), jnp.float32, -bound, bound)

    per_layer = []
    for i in range(LAYERS):
        lk = jax.random.split(keys[3 + i], 5)
        per_layer.append(dict(
            in_proj=lin(lk[0], EMB, QKV),
            o_proj=lin(lk[1], EMB, EMB),
            gate=lin(lk[2], EMB, HID),
            up=lin(lk[3], EMB, HID),
            down=lin(lk[4], HID, EMB),
        ))
    return {
        "tok_embedding": jax.random.normal(keys[0], (VOCAB, EMB), jnp.float32),
        "lm_head": lin(keys[1], EMB, VOCAB),
        "norm": jnp.ones((1, EMB), jnp.float32),
        "attn_norm": jnp.ones((LAYERS, 1, EMB), jnp.float32),
        "ffn_norm": jnp.ones((LAYERS, 1, EMB), jnp.float32),
        "in_proj": jnp.stack([p["in_proj"] for p in per_layer]),
        "o_proj": jnp.stack([p["o_proj"] for p in per_layer]),
        "gate": jnp.stack([p["gate"] for p in per_layer]),
        "up": jnp.stack([p["up"] for p in per_layer]),
        "down": jnp.stack([p["down"] for p in per_layer]),
    }


if __name__ == "__main__":
    key = jax.random.PRNGKey(0)
    pkey, ikey = jax.random.split(key)
    params = init_params(pkey)

    B, S = 2, MAX_SEQ
    idx = jax.random.randint(ikey, (B, S), 0, VOCAB)

    fwd = jax.jit(mistral_forward)
    logits = fwd(params, idx)
    jax.block_until_ready(logits)

    assert logits.shape == (B, S, VOCAB), logits.shape
    assert bool(jnp.all(jnp.isfinite(logits)))

    ref = reference_forward(params, idx)
    max_err = float(jnp.max(jnp.abs(logits - ref)))
    assert bool(jnp.allclose(logits, ref, rtol=2e-2, atol=2e-2)), max_err
    print("KERNEL_OK")
</pallas_src>

<mosaic_0001>
module attributes {stable_mosaic.version = 11 : i64} {
  func.func @_mistral_kernel(%arg0: i32, %arg1: memref<16x32xf32, #tpu.memory_space<vmem>>, %arg2: memref<2x32x128xf32, #tpu.memory_space<vmem>>, %arg3: memref<2x32x32xf32, #tpu.memory_space<vmem>>, %arg4: memref<2x32x128xf32, #tpu.memory_space<vmem>>, %arg5: memref<2x64x32xf32, #tpu.memory_space<vmem>>, %arg6: memref<5x1x32xf32, #tpu.memory_space<vmem>>, %arg7: memref<32x128xf32, #tpu.memory_space<vmem>>, %arg8: memref<16x128xf32, #tpu.memory_space<vmem>>, %arg9: memref<16x16xf32, #tpu.memory_space<vmem>>, %arg10: memref<16x128xf32, #tpu.memory_space<vmem>>, %arg11: memref<64x16xf32, #tpu.memory_space<vmem>>) attributes {dimension_semantics = [#tpu.dimension_semantics<arbitrary>], iteration_bounds = array<i64: 1>, scalar_prefetch = 0 : i64, scratch_operands = 1 : i64, tpu.core_type = #tpu.core_type<tc>, window_params = [{pipeline_mode = #tpu.pipeline_mode<synchronous>, transform_indices = @transform_0, window_bounds = array<i64: 16, 32>}, {pipeline_mode = #tpu.pipeline_mode<synchronous>, transform_indices = @transform_1, window_bounds = array<i64: 2, 32, 128>}, {pipeline_mode = #tpu.pipeline_mode<synchronous>, transform_indices = @transform_2, window_bounds = array<i64: 2, 32, 32>}, {pipeline_mode = #tpu.pipeline_mode<synchronous>, transform_indices = @transform_3, window_bounds = array<i64: 2, 32, 128>}, {pipeline_mode = #tpu.pipeline_mode<synchronous>, transform_indices = @transform_4, window_bounds = array<i64: 2, 64, 32>}, {pipeline_mode = #tpu.pipeline_mode<synchronous>, transform_indices = @transform_5, window_bounds = array<i64: 5, 1, 32>}, {pipeline_mode = #tpu.pipeline_mode<synchronous>, transform_indices = @transform_6, window_bounds = array<i64: 32, 128>}, {pipeline_mode = #tpu.pipeline_mode<synchronous>, transform_indices = @transform_7, window_bounds = array<i64: 16, 128>}, {pipeline_mode = #tpu.pipeline_mode<synchronous>, transform_indices = @transform_8, window_bounds = array<i64: 16, 16>}, {pipeline_mode = #tpu.pipeline_mode<synchronous>, transform_indices = @transform_9, window_bounds = array<i64: 16, 128>}]} {
    %c0 = arith.constant 0 : index
    %c0_0 = arith.constant 0 : index
    %0 = vector.load %arg1[%c0, %c0_0] : memref<16x32xf32, #tpu.memory_space<vmem>>, vector<16x32xf32>
    %c0_1 = arith.constant 0 : index
    %c0_2 = arith.constant 0 : index
    %1 = vector.load %arg8[%c0_1, %c0_2] : memref<16x128xf32, #tpu.memory_space<vmem>>, vector<16x128xf32>
    %c0_3 = arith.constant 0 : index
    %c0_4 = arith.constant 0 : index
    %2 = vector.load %arg9[%c0_3, %c0_4] : memref<16x16xf32, #tpu.memory_space<vmem>>, vector<16x16xf32>
    %c0_5 = arith.constant 0 : index
    %c0_6 = arith.constant 0 : index
    %c0_7 = arith.constant 0 : index
    %3 = vector.load %arg6[%c0_5, %c0_6, %c0_7] : memref<5x1x32xf32, #tpu.memory_space<vmem>>, vector<1x1x32xf32>
    %4 = vector.shape_cast %3 : vector<1x1x32xf32> to vector<1x32xf32>
    %5 = arith.mulf %0, %0 : vector<16x32xf32>
    %cst = arith.constant dense<0.000000e+00> : vector<16xf32>
    %6 = vector.multi_reduction <add>, %5, %cst [1] : vector<16x32xf32> to vector<16xf32>
    %7 = vector.shape_cast %6 : vector<16xf32> to vector<16x1xf32>
    %cst_8 = arith.constant 3.200000e+01 : f32
    %8 = vector.broadcast %cst_8 : f32 to vector<16x1xf32>
    %9 = arith.divf %7, %8 : vector<16x1xf32>
    %cst_9 = arith.constant 9.99999974E-6 : f32
    %10 = vector.broadcast %cst_9 : f32 to vector<16x1xf32>
    %11 = arith.addf %9, %10 : vector<16x1xf32>
    %12 = math.rsqrt %11 : vector<16x1xf32>
    %13 = vector.broadcast %12 : vector<16x1xf32> to vector<16x32xf32>
    %14 = arith.mulf %0, %13 : vector<16x32xf32>
    %15 = vector.broadcast %4 : vector<1x32xf32> to vector<16x32xf32>
    %16 = arith.mulf %14, %15 : vector<16x32xf32>
    %c0_10 = arith.constant 0 : index
    %c0_11 = arith.constant 0 : index
    %c0_12 = arith.constant 0 : index
    %17 = vector.load %arg2[%c0_10, %c0_11, %c0_12] : memref<2x32x128xf32, #tpu.memory_space<vmem>>, vector<1x32x128xf32>
    %18 = vector.shape_cast %17 : vector<1x32x128xf32> to vector<32x128xf32>
    %cst_13 = arith.constant dense<0.000000e+00> : vector<16x128xf32>
    %19 = tpu.matmul %16, %18, %cst_13 {dimension_numbers = #tpu.dot_dimension_numbers<[1], [0], [0], [1], [0, 0, 1, 1], [], []>} : vector<16x32xf32>, vector<32x128xf32>, vector<16x128xf32> -> vector<16x128xf32>
    %20 = arith.mulf %19, %1 : vector<16x128xf32>
    %21 = vector.extract_strided_slice %20 {offsets = [0, 0], sizes = [16, 32], strides = [1, 1]} : vector<16x128xf32> to vector<16x32xf32>
    %22 = vector.extract_strided_slice %20 {offsets = [0, 64], sizes = [16, 32], strides = [1, 1]} : vector<16x128xf32> to vector<16x32xf32>
    %23 = arith.addf %21, %22 : vector<16x32xf32>
    %24 = vector.extract_strided_slice %20 {offsets = [0, 32], sizes = [16, 16], strides = [1, 1]} : vector<16x128xf32> to vector<16x16xf32>
    %25 = vector.extract_strided_slice %20 {offsets = [0, 96], sizes = [16, 16], strides = [1, 1]} : vector<16x128xf32> to vector<16x16xf32>
    %26 = arith.addf %24, %25 : vector<16x16xf32>
    %27 = vector.extract_strided_slice %19 {offsets = [0, 48], sizes = [16, 16], strides = [1, 1]} : vector<16x128xf32> to vector<16x16xf32>
    %28 = vector.extract_strided_slice %23 {offsets = [0, 0], sizes = [16, 8], strides = [1, 1]} : vector<16x32xf32> to vector<16x8xf32>
    %29 = vector.extract_strided_slice %26 {offsets = [0, 0], sizes = [16, 8], strides = [1, 1]} : vector<16x16xf32> to vector<16x8xf32>
    %cst_14 = arith.constant dense<0.000000e+00> : vector<16x16xf32>
    %30 = tpu.matmul %28, %29, %cst_14 {dimension_numbers = #tpu.dot_dimension_numbers<[1], [1], [0], [0], [0, 0, 1, 0], [], []>} : vector<16x8xf32>, vector<16x8xf32>, vector<16x16xf32> -> vector<16x16xf32>
    %31 = arith.addf %30, %2 : vector<16x16xf32>
    %c0_15 = arith.constant 0 : index
    %c0_16 = arith.constant 0 : index
    %32 = vector.load %arg11[%c0_15, %c0_16] : memref<64x16xf32, #tpu.memory_space<vmem>>, vector<16x16xf32>
    tpu.vector_store %arg11[%c0_15, %c0_16], %31 {strides = array<i32>} : memref<64x16xf32, #tpu.memory_space<vmem>>, vector<16x16xf32>,
    %33 = vector.extract_strided_slice %23 {offsets = [0, 8], sizes = [16, 8], strides = [1, 1]} : vector<16x32xf32> to vector<16x8xf32>
    %34 = vector.extract_strided_slice %26 {offsets = [0, 0], sizes = [16, 8], strides = [1, 1]} : vector<16x16xf32> to vector<16x8xf32>
    %cst_17 = arith.constant dense<0.000000e+00> : vector<16x16xf32>
    %35 = tpu.matmul %33, %34, %cst_17 {dimension_numbers = #tpu.dot_dimension_numbers<[1], [1], [0], [0], [0, 0, 1, 0], [], []>} : vector<16x8xf32>, vector<16x8xf32>, vector<16x16xf32> -> vector<16x16xf32>
    %36 = arith.addf %35, %2 : vector<16x16xf32>
    %c16 = arith.constant 16 : index
    %c0_18 = arith.constant 0 : index
    %37 = vector.load %arg11[%c16, %c0_18] : memref<64x16xf32, #tpu.memory_space<vmem>>, vector<16x16xf32>
    tpu.vector_store %arg11[%c16, %c0_18], %36 {strides = array<i32>} : memref<64x16xf32, #tpu.memory_space<vmem>>, vector<16x16xf32>,
    %38 = vector.extract_strided_slice %23 {offsets = [0, 16], sizes = [16, 8], strides = [1, 1]} : vector<16x32xf32> to vector<16x8xf32>
    %39 = vector.extract_strided_slice %26 {offsets = [0, 8], sizes = [16, 8], strides = [1, 1]} : vector<16x16xf32> to vector<16x8xf32>
    %cst_19 = arith.constant dense<0.000000e+00> : vector<16x16xf32>
    %40 = tpu.matmul %38, %39, %cst_19 {dimension_numbers = #tpu.dot_dimension_numbers<[1], [1], [0], [0], [0, 0, 1, 0], [], []>} : vector<16x8xf32>, vector<16x8xf32>, vector<16x16xf32> -> vector<16x16xf32>
    %41 = arith.addf %40, %2 : vector<16x16xf32>
    %c32 = arith.constant 32 : index
    %c0_20 = arith.constant 0 : index
    %42 = vector.load %arg11[%c32, %c0_20] : memref<64x16xf32, #tpu.memory_space<vmem>>, vector<16x16xf32>
    tpu.vector_store %arg11[%c32, %c0_20], %41 {strides = array<i32>} : memref<64x16xf32, #tpu.memory_space<vmem>>, vector<16x16xf32>,
    %43 = vector.extract_strided_slice %23 {offsets = [0, 24], sizes = [16, 8], strides = [1, 1]} : vector<16x32xf32> to vector<16x8xf32>
    %44 = vector.extract_strided_slice %26 {offsets = [0, 8], sizes = [16, 8], strides = [1, 1]} : vector<16x16xf32> to vector<16x8xf32>
    %cst_21 = arith.constant dense<0.000000e+00> : vector<16x16xf32>
    %45 = tpu.matmul %43, %44, %cst_21 {dimension_numbers = #tpu.dot_dimension_numbers<[1], [1], [0], [0], [0, 0, 1, 0], [], []>} : vector<16x8xf32>, vector<16x8xf32>, vector<16x16xf32> -> vector<16x16xf32>
    %46 = arith.addf %45, %2 : vector<16x16xf32>
    %c48 = arith.constant 48 : index
    %c0_22 = arith.constant 0 : index
    %47 = vector.load %arg11[%c48, %c0_22] : memref<64x16xf32, #tpu.memory_space<vmem>>, vector<16x16xf32>
    tpu.vector_store %arg11[%c48, %c0_22], %46 {strides = array<i32>} : memref<64x16xf32, #tpu.memory_space<vmem>>, vector<16x16xf32>,
    %c0_23 = arith.constant 0 : index
    %c0_24 = arith.constant 0 : index
    %48 = vector.load %arg11[%c0_23, %c0_24] : memref<64x16xf32, #tpu.memory_space<vmem>>, vector<64x16xf32>
    %cst_25 = arith.constant dense<0xFF800000> : vector<64xf32>
    %49 = vector.multi_reduction <maximumf>, %48, %cst_25 [1] : vector<64x16xf32> to vector<64xf32>
    %50 = vector.shape_cast %49 : vector<64xf32> to vector<64x1xf32>
    %51 = vector.broadcast %50 : vector<64x1xf32> to vector<64x16xf32>
    %52 = arith.subf %48, %51 : vector<64x16xf32>
    %53 = math.exp %52 : vector<64x16xf32>
    %cst_26 = arith.constant dense<0.000000e+00> : vector<64xf32>
    %54 = vector.multi_reduction <add>, %53, %cst_26 [1] : vector<64x16xf32> to vector<64xf32>
    %55 = vector.shape_cast %54 : vector<64xf32> to vector<64x1xf32>
    %56 = tpu.reciprocal %55 {approx = true} : vector<64x1xf32> -> vector<64x1xf32>
    %57 = vector.broadcast %56 : vector<64x1xf32> to vector<64x16xf32>
    %58 = arith.mulf %53, %57 : vector<64x16xf32>
    %c0_27 = arith.constant 0 : index
    %c0_28 = arith.constant 0 : index
    %c0_29 = arith.constant 0 : index
    %59 = vector.load %arg3[%c0_27, %c0_28, %c0_29] : memref<2x32x32xf32, #tpu.memory_space<vmem>>, vector<1x32x32xf32>
    %60 = vector.shape_cast %59 : vector<1x32x32xf32> to vector<32x32xf32>
    %cst_30 = arith.constant 0.000000e+00 : f32
    %61 = vector.broadcast %cst_30 : f32 to vector<16x32xf32>
    %62 = vector.extract_strided_slice %58 {offsets = [0, 0], sizes = [16, 16], strides = [1, 1]} : vector<64x16xf32> to vector<16x16xf32>
    %63 = vector.extract_strided_slice %27 {offsets = [0, 0], sizes = [16, 8], strides = [1, 1]} : vector<16x16xf32> to vector<16x8xf32>
    %cst_31 = arith.constant dense<0.000000e+00> : vector<16x8xf32>
    %64 = tpu.matmul %62, %63, %cst_31 {dimension_numbers = #tpu.dot_dimension_numbers<[1], [0], [0], [1], [0, 0, 1, 1], [], []>} : vector<16x16xf32>, vector<16x8xf32>, vector<16x8xf32> -> vector<16x8xf32>
    %65 = vector.extract_strided_slice %60 {offsets = [0, 0], sizes = [8, 32], strides = [1, 1]} : vector<32x32xf32> to vector<8x32xf32>
    %cst_32 = arith.constant dense<0.000000e+00> : vector<16x32xf32>
    %66 = tpu.matmul %64, %65, %cst_32 {dimension_numbers = #tpu.dot_dimension_numbers<[1], [0], [0], [1], [0, 0, 1, 1], [], []>} : vector<16x8xf32>, vector<8x32xf32>, vector<16x32xf32> -> vector<16x32xf32>
    %67 = arith.addf %61, %66 : vector<16x32xf32>
    %68 = vector.extract_strided_slice %58 {offsets = [16, 0], sizes = [16, 16], strides = [1, 1]} : vector<64x16xf32> to vector<16x16xf32>
    %69 = vector.extract_strided_slice %27 {offsets = [0, 0], sizes = [16, 8], strides = [1, 1]} : vector<16x16xf32> to vector<16x8xf32>
    %cst_33 = arith.constant dense<0.000000e+00> : vector<16x8xf32>
    %70 = tpu.matmul %68, %69, %cst_33 {dimension_numbers = #tpu.dot_dimension_numbers<[1], [0], [0], [1], [0, 0, 1, 1], [], []>} : vector<16x16xf32>, vector<16x8xf32>, vector<16x8xf32> -> vector<16x8xf32>
    %71 = vector.extract_strided_slice %60 {offsets = [8, 0], sizes = [8, 32], strides = [1, 1]} : vector<32x32xf32> to vector<8x32xf32>
    %cst_34 = arith.constant dense<0.000000e+00> : vector<16x32xf32>
    %72 = tpu.matmul %70, %71, %cst_34 {dimension_numbers = #tpu.dot_dimension_numbers<[1], [0], [0], [1], [0, 0, 1, 1], [], []>} : vector<16x8xf32>, vector<8x32xf32>, vector<16x32xf32> -> vector<16x32xf32>
    %73 = arith.addf %67, %72 : vector<16x32xf32>
    %74 = vector.extract_strided_slice %58 {offsets = [32, 0], sizes = [16, 16], strides = [1, 1]} : vector<64x16xf32> to vector<16x16xf32>
    %75 = vector.extract_strided_slice %27 {offsets = [0, 8], sizes = [16, 8], strides = [1, 1]} : vector<16x16xf32> to vector<16x8xf32>
    %cst_35 = arith.constant dense<0.000000e+00> : vector<16x8xf32>
    %76 = tpu.matmul %74, %75, %cst_35 {dimension_numbers = #tpu.dot_dimension_numbers<[1], [0], [0], [1], [0, 0, 1, 1], [], []>} : vector<16x16xf32>, vector<16x8xf32>, vector<16x8xf32> -> vector<16x8xf32>
    %77 = vector.extract_strided_slice %60 {offsets = [16, 0], sizes = [8, 32], strides = [1, 1]} : vector<32x32xf32> to vector<8x32xf32>
    %cst_36 = arith.constant dense<0.000000e+00> : vector<16x32xf32>
    %78 = tpu.matmul %76, %77, %cst_36 {dimension_numbers = #tpu.dot_dimension_numbers<[1], [0], [0], [1], [0, 0, 1, 1], [], []>} : vector<16x8xf32>, vector<8x32xf32>, vector<16x32xf32> -> vector<16x32xf32>
    %79 = arith.addf %73, %78 : vector<16x32xf32>
    %80 = vector.extract_strided_slice %58 {offsets = [48, 0], sizes = [16, 16], strides = [1, 1]} : vector<64x16xf32> to vector<16x16xf32>
    %81 = vector.extract_strided_slice %27 {offsets = [0, 8], sizes = [16, 8], strides = [1, 1]} : vector<16x16xf32> to vector<16x8xf32>
    %cst_37 = arith.constant dense<0.000000e+00> : vector<16x8xf32>
    %82 = tpu.matmul %80, %81, %cst_37 {dimension_numbers = #tpu.dot_dimension_numbers<[1], [0], [0], [1], [0, 0, 1, 1], [], []>} : vector<16x16xf32>, vector<16x8xf32>, vector<16x8xf32> -> vector<16x8xf32>
    %83 = vector.extract_strided_slice %60 {offsets = [24, 0], sizes = [8, 32], strides = [1, 1]} : vector<32x32xf32> to vector<8x32xf32>
    %cst_38 = arith.constant dense<0.000000e+00> : vector<16x32xf32>
    %84 = tpu.matmul %82, %83, %cst_38 {dimension_numbers = #tpu.dot_dimension_numbers<[1], [0], [0], [1], [0, 0, 1, 1], [], []>} : vector<16x8xf32>, vector<8x32xf32>, vector<16x32xf32> -> vector<16x32xf32>
    %85 = arith.addf %79, %84 : vector<16x32xf32>
    %86 = arith.addf %0, %85 : vector<16x32xf32>
    %c1 = arith.constant 1 : index
    %c0_39 = arith.constant 0 : index
    %c0_40 = arith.constant 0 : index
    %87 = vector.load %arg6[%c1, %c0_39, %c0_40] : memref<5x1x32xf32, #tpu.memory_space<vmem>>, vector<1x1x32xf32>
    %88 = vector.shape_cast %87 : vector<1x1x32xf32> to vector<1x32xf32>
    %89 = arith.mulf %86, %86 : vector<16x32xf32>
    %cst_41 = arith.constant dense<0.000000e+00> : vector<16xf32>
    %90 = vector.multi_reduction <add>, %89, %cst_41 [1] : vector<16x32xf32> to vector<16xf32>
    %91 = vector.shape_cast %90 : vector<16xf32> to vector<16x1xf32>
    %cst_42 = arith.constant 3.200000e+01 : f32
    %92 = vector.broadcast %cst_42 : f32 to vector<16x1xf32>
    %93 = arith.divf %91, %92 : vector<16x1xf32>
    %cst_43 = arith.constant 9.99999974E-6 : f32
    %94 = vector.broadcast %cst_43 : f32 to vector<16x1xf32>
    %95 = arith.addf %93, %94 : vector<16x1xf32>
    %96 = math.rsqrt %95 : vector<16x1xf32>
    %97 = vector.broadcast %96 : vector<16x1xf32> to vector<16x32xf32>
    %98 = arith.mulf %86, %97 : vector<16x32xf32>
    %99 = vector.broadcast %88 : vector<1x32xf32> to vector<16x32xf32>
    %100 = arith.mulf %98, %99 : vector<16x32xf32>
    %c0_44 = arith.constant 0 : index
    %c0_45 = arith.constant 0 : index
    %c0_46 = arith.constant 0 : index
    %101 = vector.load %arg4[%c0_44, %c0_45, %c0_46] : memref<2x32x128xf32, #tpu.memory_space<vmem>>, vector<1x32x128xf32>
    %102 = vector.shape_cast %101 : vector<1x32x128xf32> to vector<32x128xf32>
    %cst_47 = arith.constant dense<0.000000e+00> : vector<16x128xf32>
    %103 = tpu.matmul %100, %102, %cst_47 {dimension_numbers = #tpu.dot_dimension_numbers<[1], [0], [0], [1], [0, 0, 1, 1], [], []>} : vector<16x32xf32>, vector<32x128xf32>, vector<16x128xf32> -> vector<16x128xf32>
    %104 = vector.extract_strided_slice %103 {offsets = [0, 0], sizes = [16, 64], strides = [1, 1]} : vector<16x128xf32> to vector<16x64xf32>
    %105 = vector.extract_strided_slice %103 {offsets = [0, 64], sizes = [16, 64], strides = [1, 1]} : vector<16x128xf32> to vector<16x64xf32>
    %106 = arith.negf %104 : vector<16x64xf32>
    %107 = math.exp %106 : vector<16x64xf32>
    %cst_48 = arith.constant 1.000000e+00 : f32
    %108 = vector.broadcast %cst_48 : f32 to vector<16x64xf32>
    %109 = arith.addf %108, %107 : vector<16x64xf32>
    %110 = arith.divf %108, %109 : vector<16x64xf32>
    %111 = arith.mulf %104, %110 : vector<16x64xf32>
    %112 = arith.mulf %111, %105 : vector<16x64xf32>
    %c0_49 = arith.constant 0 : index
    %c0_50 = arith.constant 0 : index
    %c0_51 = arith.constant 0 : index
    %113 = vector.load %arg5[%c0_49, %c0_50, %c0_51] : memref<2x64x32xf32, #tpu.memory_space<vmem>>, vector<1x64x32xf32>
    %114 = vector.shape_cast %113 : vector<1x64x32xf32> to vector<64x32xf32>
    %cst_52 = arith.constant dense<0.000000e+00> : vector<16x32xf32>
    %115 = tpu.matmul %112, %114, %cst_52 {dimension_numbers = #tpu.dot_dimension_numbers<[1], [0], [0], [1], [0, 0, 1, 1], [], []>} : vector<16x64xf32>, vector<64x32xf32>, vector<16x32xf32> -> vector<16x32xf32>
    %116 = arith.addf %86, %115 : vector<16x32xf32>
    %c2 = arith.constant 2 : index
    %c0_53 = arith.constant 0 : index
    %c0_54 = arith.constant 0 : index
    %117 = vector.load %arg6[%c2, %c0_53, %c0_54] : memref<5x1x32xf32, #tpu.memory_space<vmem>>, vector<1x1x32xf32>
    %118 = vector.shape_cast %117 : vector<1x1x32xf32> to vector<1x32xf32>
    %119 = arith.mulf %116, %116 : vector<16x32xf32>
    %cst_55 = arith.constant dense<0.000000e+00> : vector<16xf32>
    %120 = vector.multi_reduction <add>, %119, %cst_55 [1] : vector<16x32xf32> to vector<16xf32>
    %121 = vector.shape_cast %120 : vector<16xf32> to vector<16x1xf32>
    %cst_56 = arith.constant 3.200000e+01 : f32
    %122 = vector.broadcast %cst_56 : f32 to vector<16x1xf32>
    %123 = arith.divf %121, %122 : vector<16x1xf32>
    %cst_57 = arith.constant 9.99999974E-6 : f32
    %124 = vector.broadcast %cst_57 : f32 to vector<16x1xf32>
    %125 = arith.addf %123, %124 : vector<16x1xf32>
    %126 = math.rsqrt %125 : vector<16x1xf32>
    %127 = vector.broadcast %126 : vector<16x1xf32> to vector<16x32xf32>
    %128 = arith.mulf %116, %127 : vector<16x32xf32>
    %129 = vector.broadcast %118 : vector<1x32xf32> to vector<16x32xf32>
    %130 = arith.mulf %128, %129 : vector<16x32xf32>
    %c1_58 = arith.constant 1 : index
    %c0_59 = arith.constant 0 : index
    %c0_60 = arith.constant 0 : index
    %131 = vector.load %arg2[%c1_58, %c0_59, %c0_60] : memref<2x32x128xf32, #tpu.memory_space<vmem>>, vector<1x32x128xf32>
    %132 = vector.shape_cast %131 : vector<1x32x128xf32> to vector<32x128xf32>
    %cst_61 = arith.constant dense<0.000000e+00> : vector<16x128xf32>
    %133 = tpu.matmul %130, %132, %cst_61 {dimension_numbers = #tpu.dot_dimension_numbers<[1], [0], [0], [1], [0, 0, 1, 1], [], []>} : vector<16x32xf32>, vector<32x128xf32>, vector<16x128xf32> -> vector<16x128xf32>
    %134 = arith.mulf %133, %1 : vector<16x128xf32>
    %135 = vector.extract_strided_slice %134 {offsets = [0, 0], sizes = [16, 32], strides = [1, 1]} : vector<16x128xf32> to vector<16x32xf32>
    %136 = vector.extract_strided_slice %134 {offsets = [0, 64], sizes = [16, 32], strides = [1, 1]} : vector<16x128xf32> to vector<16x32xf32>
    %137 = arith.addf %135, %136 : vector<16x32xf32>
    %138 = vector.extract_strided_slice %134 {offsets = [0, 32], sizes = [16, 16], strides = [1, 1]} : vector<16x128xf32> to vector<16x16xf32>
    %139 = vector.extract_strided_slice %134 {offsets = [0, 96], sizes = [16, 16], strides = [1, 1]} : vector<16x128xf32> to vector<16x16xf32>
    %140 = arith.addf %138, %139 : vector<16x16xf32>
    %141 = vector.extract_strided_slice %133 {offsets = [0, 48], sizes = [16, 16], strides = [1, 1]} : vector<16x128xf32> to vector<16x16xf32>
    %142 = vector.extract_strided_slice %137 {offsets = [0, 0], sizes = [16, 8], strides = [1, 1]} : vector<16x32xf32> to vector<16x8xf32>
    %143 = vector.extract_strided_slice %140 {offsets = [0, 0], sizes = [16, 8], strides = [1, 1]} : vector<16x16xf32> to vector<16x8xf32>
    %cst_62 = arith.constant dense<0.000000e+00> : vector<16x16xf32>
    %144 = tpu.matmul %142, %143, %cst_62 {dimension_numbers = #tpu.dot_dimension_numbers<[1], [1], [0], [0], [0, 0, 1, 0], [], []>} : vector<16x8xf32>, vector<16x8xf32>, vector<16x16xf32> -> vector<16x16xf32>
    %145 = arith.addf %144, %2 : vector<16x16xf32>
    %c0_63 = arith.constant 0 : index
    %c0_64 = arith.constant 0 : index
    %146 = vector.load %arg11[%c0_63, %c0_64] : memref<64x16xf32, #tpu.memory_space<vmem>>, vector<16x16xf32>
    tpu.vector_store %arg11[%c0_63, %c0_64], %145 {strides = array<i32>} : memref<64x16xf32, #tpu.memory_space<vmem>>, vector<16x16xf32>,
    %147 = vector.extract_strided_slice %137 {offsets = [0, 8], sizes = [16, 8], strides = [1, 1]} : vector<16x32xf32> to vector<16x8xf32>
    %148 = vector.extract_strided_slice %140 {offsets = [0, 0], sizes = [16, 8], strides = [1, 1]} : vector<16x16xf32> to vector<16x8xf32>
    %cst_65 = arith.constant dense<0.000000e+00> : vector<16x16xf32>
    %149 = tpu.matmul %147, %148, %cst_65 {dimension_numbers = #tpu.dot_dimension_numbers<[1], [1], [0], [0], [0, 0, 1, 0], [], []>} : vector<16x8xf32>, vector<16x8xf32>, vector<16x16xf32> -> vector<16x16xf32>
    %150 = arith.addf %149, %2 : vector<16x16xf32>
    %c16_66 = arith.constant 16 : index
    %c0_67 = arith.constant 0 : index
    %151 = vector.load %arg11[%c16_66, %c0_67] : memref<64x16xf32, #tpu.memory_space<vmem>>, vector<16x16xf32>
    tpu.vector_store %arg11[%c16_66, %c0_67], %150 {strides = array<i32>} : memref<64x16xf32, #tpu.memory_space<vmem>>, vector<16x16xf32>,
    %152 = vector.extract_strided_slice %137 {offsets = [0, 16], sizes = [16, 8], strides = [1, 1]} : vector<16x32xf32> to vector<16x8xf32>
    %153 = vector.extract_strided_slice %140 {offsets = [0, 8], sizes = [16, 8], strides = [1, 1]} : vector<16x16xf32> to vector<16x8xf32>
    %cst_68 = arith.constant dense<0.000000e+00> : vector<16x16xf32>
    %154 = tpu.matmul %152, %153, %cst_68 {dimension_numbers = #tpu.dot_dimension_numbers<[1], [1], [0], [0], [0, 0, 1, 0], [], []>} : vector<16x8xf32>, vector<16x8xf32>, vector<16x16xf32> -> vector<16x16xf32>
    %155 = arith.addf %154, %2 : vector<16x16xf32>
    %c32_69 = arith.constant 32 : index
    %c0_70 = arith.constant 0 : index
    %156 = vector.load %arg11[%c32_69, %c0_70] : memref<64x16xf32, #tpu.memory_space<vmem>>, vector<16x16xf32>
    tpu.vector_store %arg11[%c32_69, %c0_70], %155 {strides = array<i32>} : memref<64x16xf32, #tpu.memory_space<vmem>>, vector<16x16xf32>,
    %157 = vector.extract_strided_slice %137 {offsets = [0, 24], sizes = [16, 8], strides = [1, 1]} : vector<16x32xf32> to vector<16x8xf32>
    %158 = vector.extract_strided_slice %140 {offsets = [0, 8], sizes = [16, 8], strides = [1, 1]} : vector<16x16xf32> to vector<16x8xf32>
    %cst_71 = arith.constant dense<0.000000e+00> : vector<16x16xf32>
    %159 = tpu.matmul %157, %158, %cst_71 {dimension_numbers = #tpu.dot_dimension_numbers<[1], [1], [0], [0], [0, 0, 1, 0], [], []>} : vector<16x8xf32>, vector<16x8xf32>, vector<16x16xf32> -> vector<16x16xf32>
    %160 = arith.addf %159, %2 : vector<16x16xf32>
    %c48_72 = arith.constant 48 : index
    %c0_73 = arith.constant 0 : index
    %161 = vector.load %arg11[%c48_72, %c0_73] : memref<64x16xf32, #tpu.memory_space<vmem>>, vector<16x16xf32>
    tpu.vector_store %arg11[%c48_72, %c0_73], %160 {strides = array<i32>} : memref<64x16xf32, #tpu.memory_space<vmem>>, vector<16x16xf32>,
    %c0_74 = arith.constant 0 : index
    %c0_75 = arith.constant 0 : index
    %162 = vector.load %arg11[%c0_74, %c0_75] : memref<64x16xf32, #tpu.memory_space<vmem>>, vector<64x16xf32>
    %cst_76 = arith.constant dense<0xFF800000> : vector<64xf32>
    %163 = vector.multi_reduction <maximumf>, %162, %cst_76 [1] : vector<64x16xf32> to vector<64xf32>
    %164 = vector.shape_cast %163 : vector<64xf32> to vector<64x1xf32>
    %165 = vector.broadcast %164 : vector<64x1xf32> to vector<64x16xf32>
    %166 = arith.subf %162, %165 : vector<64x16xf32>
    %167 = math.exp %166 : vector<64x16xf32>
    %cst_77 = arith.constant dense<0.000000e+00> : vector<64xf32>
    %168 = vector.multi_reduction <add>, %167, %cst_77 [1] : vector<64x16xf32> to vector<64xf32>
    %169 = vector.shape_cast %168 : vector<64xf32> to vector<64x1xf32>
    %170 = tpu.reciprocal %169 {approx = true} : vector<64x1xf32> -> vector<64x1xf32>
    %171 = vector.broadcast %170 : vector<64x1xf32> to vector<64x16xf32>
    %172 = arith.mulf %167, %171 : vector<64x16xf32>
    %c1_78 = arith.constant 1 : index
    %c0_79 = arith.constant 0 : index
    %c0_80 = arith.constant 0 : index
    %173 = vector.load %arg3[%c1_78, %c0_79, %c0_80] : memref<2x32x32xf32, #tpu.memory_space<vmem>>, vector<1x32x32xf32>
    %174 = vector.shape_cast %173 : vector<1x32x32xf32> to vector<32x32xf32>
    %cst_81 = arith.constant 0.000000e+00 : f32
    %175 = vector.broadcast %cst_81 : f32 to vector<16x32xf32>
    %176 = vector.extract_strided_slice %172 {offsets = [0, 0], sizes = [16, 16], strides = [1, 1]} : vector<64x16xf32> to vector<16x16xf32>
    %177 = vector.extract_strided_slice %141 {offsets = [0, 0], sizes = [16, 8], strides = [1, 1]} : vector<16x16xf32> to vector<16x8xf32>
    %cst_82 = arith.constant dense<0.000000e+00> : vector<16x8xf32>
    %178 = tpu.matmul %176, %177, %cst_82 {dimension_numbers = #tpu.dot_dimension_numbers<[1], [0], [0], [1], [0, 0, 1, 1], [], []>} : vector<16x16xf32>, vector<16x8xf32>, vector<16x8xf32> -> vector<16x8xf32>
    %179 = vector.extract_strided_slice %174 {offsets = [0, 0], sizes = [8, 32], strides = [1, 1]} : vector<32x32xf32> to vector<8x32xf32>
    %cst_83 = arith.constant dense<0.000000e+00> : vector<16x32xf32>
    %180 = tpu.matmul %178, %179, %cst_83 {dimension_numbers = #tpu.dot_dimension_numbers<[1], [0], [0], [1], [0, 0, 1, 1], [], []>} : vector<16x8xf32>, vector<8x32xf32>, vector<16x32xf32> -> vector<16x32xf32>
    %181 = arith.addf %175, %180 : vector<16x32xf32>
    %182 = vector.extract_strided_slice %172 {offsets = [16, 0], sizes = [16, 16], strides = [1, 1]} : vector<64x16xf32> to vector<16x16xf32>
    %183 = vector.extract_strided_slice %141 {offsets = [0, 0], sizes = [16, 8], strides = [1, 1]} : vector<16x16xf32> to vector<16x8xf32>
    %cst_84 = arith.constant dense<0.000000e+00> : vector<16x8xf32>
    %184 = tpu.matmul %182, %183, %cst_84 {dimension_numbers = #tpu.dot_dimension_numbers<[1], [0], [0], [1], [0, 0, 1, 1], [], []>} : vector<16x16xf32>, vector<16x8xf32>, vector<16x8xf32> -> vector<16x8xf32>
    %185 = vector.extract_strided_slice %174 {offsets = [8, 0], sizes = [8, 32], strides = [1, 1]} : vector<32x32xf32> to vector<8x32xf32>
    %cst_85 = arith.constant dense<0.000000e+00> : vector<16x32xf32>
    %186 = tpu.matmul %184, %185, %cst_85 {dimension_numbers = #tpu.dot_dimension_numbers<[1], [0], [0], [1], [0, 0, 1, 1], [], []>} : vector<16x8xf32>, vector<8x32xf32>, vector<16x32xf32> -> vector<16x32xf32>
    %187 = arith.addf %181, %186 : vector<16x32xf32>
    %188 = vector.extract_strided_slice %172 {offsets = [32, 0], sizes = [16, 16], strides = [1, 1]} : vector<64x16xf32> to vector<16x16xf32>
    %189 = vector.extract_strided_slice %141 {offsets = [0, 8], sizes = [16, 8], strides = [1, 1]} : vector<16x16xf32> to vector<16x8xf32>
    %cst_86 = arith.constant dense<0.000000e+00> : vector<16x8xf32>
    %190 = tpu.matmul %188, %189, %cst_86 {dimension_numbers = #tpu.dot_dimension_numbers<[1], [0], [0], [1], [0, 0, 1, 1], [], []>} : vector<16x16xf32>, vector<16x8xf32>, vector<16x8xf32> -> vector<16x8xf32>
    %191 = vector.extract_strided_slice %174 {offsets = [16, 0], sizes = [8, 32], strides = [1, 1]} : vector<32x32xf32> to vector<8x32xf32>
    %cst_87 = arith.constant dense<0.000000e+00> : vector<16x32xf32>
    %192 = tpu.matmul %190, %191, %cst_87 {dimension_numbers = #tpu.dot_dimension_numbers<[1], [0], [0], [1], [0, 0, 1, 1], [], []>} : vector<16x8xf32>, vector<8x32xf32>, vector<16x32xf32> -> vector<16x32xf32>
    %193 = arith.addf %187, %192 : vector<16x32xf32>
    %194 = vector.extract_strided_slice %172 {offsets = [48, 0], sizes = [16, 16], strides = [1, 1]} : vector<64x16xf32> to vector<16x16xf32>
    %195 = vector.extract_strided_slice %141 {offsets = [0, 8], sizes = [16, 8], strides = [1, 1]} : vector<16x16xf32> to vector<16x8xf32>
    %cst_88 = arith.constant dense<0.000000e+00> : vector<16x8xf32>
    %196 = tpu.matmul %194, %195, %cst_88 {dimension_numbers = #tpu.dot_dimension_numbers<[1], [0], [0], [1], [0, 0, 1, 1], [], []>} : vector<16x16xf32>, vector<16x8xf32>, vector<16x8xf32> -> vector<16x8xf32>
    %197 = vector.extract_strided_slice %174 {offsets = [24, 0], sizes = [8, 32], strides = [1, 1]} : vector<32x32xf32> to vector<8x32xf32>
    %cst_89 = arith.constant dense<0.000000e+00> : vector<16x32xf32>
    %198 = tpu.matmul %196, %197, %cst_89 {dimension_numbers = #tpu.dot_dimension_numbers<[1], [0], [0], [1], [0, 0, 1, 1], [], []>} : vector<16x8xf32>, vector<8x32xf32>, vector<16x32xf32> -> vector<16x32xf32>
    %199 = arith.addf %193, %198 : vector<16x32xf32>
    %200 = arith.addf %116, %199 : vector<16x32xf32>
    %c3 = arith.constant 3 : index
    %c0_90 = arith.constant 0 : index
    %c0_91 = arith.constant 0 : index
    %201 = vector.load %arg6[%c3, %c0_90, %c0_91] : memref<5x1x32xf32, #tpu.memory_space<vmem>>, vector<1x1x32xf32>
    %202 = vector.shape_cast %201 : vector<1x1x32xf32> to vector<1x32xf32>
    %203 = arith.mulf %200, %200 : vector<16x32xf32>
    %cst_92 = arith.constant dense<0.000000e+00> : vector<16xf32>
    %204 = vector.multi_reduction <add>, %203, %cst_92 [1] : vector<16x32xf32> to vector<16xf32>
    %205 = vector.shape_cast %204 : vector<16xf32> to vector<16x1xf32>
    %cst_93 = arith.constant 3.200000e+01 : f32
    %206 = vector.broadcast %cst_93 : f32 to vector<16x1xf32>
    %207 = arith.divf %205, %206 : vector<16x1xf32>
    %cst_94 = arith.constant 9.99999974E-6 : f32
    %208 = vector.broadcast %cst_94 : f32 to vector<16x1xf32>
    %209 = arith.addf %207, %208 : vector<16x1xf32>
    %210 = math.rsqrt %209 : vector<16x1xf32>
    %211 = vector.broadcast %210 : vector<16x1xf32> to vector<16x32xf32>
    %212 = arith.mulf %200, %211 : vector<16x32xf32>
    %213 = vector.broadcast %202 : vector<1x32xf32> to vector<16x32xf32>
    %214 = arith.mulf %212, %213 : vector<16x32xf32>
    %c1_95 = arith.constant 1 : index
    %c0_96 = arith.constant 0 : index
    %c0_97 = arith.constant 0 : index
    %215 = vector.load %arg4[%c1_95, %c0_96, %c0_97] : memref<2x32x128xf32, #tpu.memory_space<vmem>>, vector<1x32x128xf32>
    %216 = vector.shape_cast %215 : vector<1x32x128xf32> to vector<32x128xf32>
    %cst_98 = arith.constant dense<0.000000e+00> : vector<16x128xf32>
    %217 = tpu.matmul %214, %216, %cst_98 {dimension_numbers = #tpu.dot_dimension_numbers<[1], [0], [0], [1], [0, 0, 1, 1], [], []>} : vector<16x32xf32>, vector<32x128xf32>, vector<16x128xf32> -> vector<16x128xf32>
    %218 = vector.extract_strided_slice %217 {offsets = [0, 0], sizes = [16, 64], strides = [1, 1]} : vector<16x128xf32> to vector<16x64xf32>
    %219 = vector.extract_strided_slice %217 {offsets = [0, 64], sizes = [16, 64], strides = [1, 1]} : vector<16x128xf32> to vector<16x64xf32>
    %220 = arith.negf %218 : vector<16x64xf32>
    %221 = math.exp %220 : vector<16x64xf32>
    %cst_99 = arith.constant 1.000000e+00 : f32
    %222 = vector.broadcast %cst_99 : f32 to vector<16x64xf32>
    %223 = arith.addf %222, %221 : vector<16x64xf32>
    %224 = arith.divf %222, %223 : vector<16x64xf32>
    %225 = arith.mulf %218, %224 : vector<16x64xf32>
    %226 = arith.mulf %225, %219 : vector<16x64xf32>
    %c1_100 = arith.constant 1 : index
    %c0_101 = arith.constant 0 : index
    %c0_102 = arith.constant 0 : index
    %227 = vector.load %arg5[%c1_100, %c0_101, %c0_102] : memref<2x64x32xf32, #tpu.memory_space<vmem>>, vector<1x64x32xf32>
    %228 = vector.shape_cast %227 : vector<1x64x32xf32> to vector<64x32xf32>
    %cst_103 = arith.constant dense<0.000000e+00> : vector<16x32xf32>
    %229 = tpu.matmul %226, %228, %cst_103 {dimension_numbers = #tpu.dot_dimension_numbers<[1], [0], [0], [1], [0, 0, 1, 1], [], []>} : vector<16x64xf32>, vector<64x32xf32>, vector<16x32xf32> -> vector<16x32xf32>
    %230 = arith.addf %200, %229 : vector<16x32xf32>
    %c4 = arith.constant 4 : index
    %c0_104 = arith.constant 0 : index
    %c0_105 = arith.constant 0 : index
    %231 = vector.load %arg6[%c4, %c0_104, %c0_105] : memref<5x1x32xf32, #tpu.memory_space<vmem>>, vector<1x1x32xf32>
    %232 = vector.shape_cast %231 : vector<1x1x32xf32> to vector<1x32xf32>
    %233 = arith.mulf %230, %230 : vector<16x32xf32>
    %cst_106 = arith.constant dense<0.000000e+00> : vector<16xf32>
    %234 = vector.multi_reduction <add>, %233, %cst_106 [1] : vector<16x32xf32> to vector<16xf32>
    %235 = vector.shape_cast %234 : vector<16xf32> to vector<16x1xf32>
    %cst_107 = arith.constant 3.200000e+01 : f32
    %236 = vector.broadcast %cst_107 : f32 to vector<16x1xf32>
    %237 = arith.divf %235, %236 : vector<16x1xf32>
    %cst_108 = arith.constant 9.99999974E-6 : f32
    %238 = vector.broadcast %cst_108 : f32 to vector<16x1xf32>
    %239 = arith.addf %237, %238 : vector<16x1xf32>
    %240 = math.rsqrt %239 : vector<16x1xf32>
    %241 = vector.broadcast %240 : vector<16x1xf32> to vector<16x32xf32>
    %242 = arith.mulf %230, %241 : vector<16x32xf32>
    %243 = vector.broadcast %232 : vector<1x32xf32> to vector<16x32xf32>
    %244 = arith.mulf %242, %243 : vector<16x32xf32>
    %c0_109 = arith.constant 0 : index
    %c0_110 = arith.constant 0 : index
    %245 = vector.load %arg7[%c0_109, %c0_110] : memref<32x128xf32, #tpu.memory_space<vmem>>, vector<32x128xf32>
    %cst_111 = arith.constant dense<0.000000e+00> : vector<16x128xf32>
    %246 = tpu.matmul %244, %245, %cst_111 {dimension_numbers = #tpu.dot_dimension_numbers<[1], [0], [0], [1], [0, 0, 1, 1], [], []>} : vector<16x32xf32>, vector<32x128xf32>, vector<16x128xf32> -> vector<16x128xf32>
    %c0_112 = arith.constant 0 : index
    %c0_113 = arith.constant 0 : index
    %247 = vector.load %arg10[%c0_112, %c0_113] : memref<16x128xf32, #tpu.memory_space<vmem>>, vector<16x128xf32>
    tpu.vector_store %arg10[%c0_112, %c0_113], %246 {strides = array<i32>} : memref<16x128xf32, #tpu.memory_space<vmem>>, vector<16x128xf32>,
    return
  }
  func.func @transform_0(%arg0: i32) -> (i32, i32) {
    %c0_i32 = arith.constant 0 : i32
    %c0_i32_0 = arith.constant 0 : i32
    %c0_i32_1 = arith.constant 0 : i32
    return %c0_i32, %c0_i32_0 : i32, i32
  }
  func.func @transform_1(%arg0: i32) -> (i32, i32, i32) {
    %c0_i32 = arith.constant 0 : i32
    %c0_i32_0 = arith.constant 0 : i32
    %c0_i32_1 = arith.constant 0 : i32
    %c0_i32_2 = arith.constant 0 : i32
    return %c0_i32, %c0_i32_0, %c0_i32_1 : i32, i32, i32
  }
  func.func @transform_2(%arg0: i32) -> (i32, i32, i32) {
    %c0_i32 = arith.constant 0 : i32
    %c0_i32_0 = arith.constant 0 : i32
    %c0_i32_1 = arith.constant 0 : i32
    %c0_i32_2 = arith.constant 0 : i32
    return %c0_i32, %c0_i32_0, %c0_i32_1 : i32, i32, i32
  }
  func.func @transform_3(%arg0: i32) -> (i32, i32, i32) {
    %c0_i32 = arith.constant 0 : i32
    %c0_i32_0 = arith.constant 0 : i32
    %c0_i32_1 = arith.constant 0 : i32
    %c0_i32_2 = arith.constant 0 : i32
    return %c0_i32, %c0_i32_0, %c0_i32_1 : i32, i32, i32
  }
  func.func @transform_4(%arg0: i32) -> (i32, i32, i32) {
    %c0_i32 = arith.constant 0 : i32
    %c0_i32_0 = arith.constant 0 : i32
    %c0_i32_1 = arith.constant 0 : i32
    %c0_i32_2 = arith.constant 0 : i32
    return %c0_i32, %c0_i32_0, %c0_i32_1 : i32, i32, i32
  }
  func.func @transform_5(%arg0: i32) -> (i32, i32, i32) {
    %c0_i32 = arith.constant 0 : i32
    %c0_i32_0 = arith.constant 0 : i32
    %c0_i32_1 = arith.constant 0 : i32
    %c0_i32_2 = arith.constant 0 : i32
    return %c0_i32, %c0_i32_0, %c0_i32_1 : i32, i32, i32
  }
  func.func @transform_6(%arg0: i32) -> (i32, i32) {
    %c0_i32 = arith.constant 0 : i32
    %c0_i32_0 = arith.constant 0 : i32
    %c0_i32_1 = arith.constant 0 : i32
    return %c0_i32, %c0_i32_0 : i32, i32
  }
  func.func @transform_7(%arg0: i32) -> (i32, i32) {
    %c0_i32 = arith.constant 0 : i32
    %c0_i32_0 = arith.constant 0 : i32
    %c0_i32_1 = arith.constant 0 : i32
    return %c0_i32, %c0_i32_0 : i32, i32
  }
  func.func @transform_8(%arg0: i32) -> (i32, i32) {
    %c0_i32 = arith.constant 0 : i32
    %c0_i32_0 = arith.constant 0 : i32
    %c0_i32_1 = arith.constant 0 : i32
    return %c0_i32, %c0_i32_0 : i32, i32
  }
  func.func @transform_9(%arg0: i32) -> (i32, i32) {
    %c0_i32 = arith.constant 0 : i32
    %c0_i32_0 = arith.constant 0 : i32
    %c0_i32_1 = arith.constant 0 : i32
    return %c0_i32, %c0_i32_0 : i32, i32
  }
}

</mosaic_0001>

<bundles_post_ra>
// kernel: tile.36
= control target key start
LH: loop header
LB: loop body
LE: loop exit
PB: predicated region body
PF: predicated region fallthrough
CT: control target
= control target key end

     0   :  { %vm36_vm0 = vcmask 1047556   ;;  %vm38_vm1 = vcmask 64512   ;;  %vm48_vm2 = vcmask 130112   ;;  %s99_s0 = inlined_call_operand.vmem [shape: f32[8,2,8], index: 0, kind: input, shape index: {}]   ;;  %s100_s1 = inlined_call_operand.vmem [shape: f32[8,16], index: 1, kind: output, shape index: {}]  }
   0x1   :  { %v50_v0 = vld [vmem:[%s99_s0 + $0xe] sm:$0x3]  ;;  %v51_v1 = vld [vmem:[%s99_s0 + $0xc] sm:$0x3]  ;;  %v52_v2 = vld [vmem:[%s99_s0 + $0xa] sm:$0x3] }
   0x2   :  { %7 = vst [vmem:[#allocation0 + $0x38] sm:$0x3] %v50_v0  ;;  %v53_v3 = vld [vmem:[%s99_s0 + $0x8] sm:$0x3]  ;;  %v54_v4 = vld [vmem:[%s99_s0 + $0x6] sm:$0x3] }
   0x3   :  { %11 = vst [vmem:[#allocation0 + $0x30] sm:$0x3] %v51_v1  ;;  %v55_v5 = vld [vmem:[%s99_s0 + $0x4] sm:$0x3]  ;;  %v56_v6 = vld [vmem:[%s99_s0 + $0x2] sm:$0x3] }
   0x4   :  { %15 = vst [vmem:[#allocation0 + $0x28] sm:$0x3] %v52_v2  ;;  %v32_v7 = vld [vmem:[%s99_s0] sm:$0x3]  ;;  %s58_s0 = smov 8  }
   0x5   :  { %19 = vst [vmem:[#allocation0 + $0x20] sm:$0x3] %v53_v3 }
   0x6   :  { %23 = vst [vmem:[#allocation0 + $0x18] sm:$0x3] %v54_v4 }
   0x7   :  { %27 = vst [vmem:[#allocation0 + $0x10] sm:$0x3] %v55_v5 }
   0x8   :  { %31 = vst [vmem:[#allocation0 + $0x8] sm:$0x3] %v56_v6 }
   0x9   :  { %33 = vst [vmem:[#allocation0] sm:$0x3] %v32_v7 }
   0xc   :  { %v35_v8 = vld [vmem:[#allocation0] ss:$8 sm:$0xf0]   ;;  %v43_v9 = vld [vmem:[#allocation0 + $0x1] ss:$8 sm:$0xf0]  }
  0x10   :  { %v34_v10 = vld [vmem:[#allocation0] ss:$8 sm:$0xf]   ;;  %v41_v11 = vld [vmem:[#allocation0 + $0x1] ss:$8 sm:$0xf]  }
  0x11   :  { %v37_v12 = vsel %vm36_vm0, %v35_v8, %v34_v10  ;;  %v45_v13 = vsel %vm36_vm0, %v43_v9, %v41_v11 }
  0x12   :  { %46 = vrot.lane.b32.xlu0 %v45_v13, %s58_s0  ;;  %39 = vst.msk [vmem:[%s100_s1] sm:$0xff] %vm38_vm1, %v37_v12  }
  0x84   :  { %v47_v14 = vpop.permute.xlu0 %46  }
  0x85   :  { %49 = vst.msk [vmem:[%s100_s1] sm:$0xff] %vm48_vm2, %v47_v14  }

// kernel: mistral_forward.1
= control target key start
LH: loop header
LB: loop body
LE: loop exit
PB: predicated region body
PF: predicated region fallthrough
CT: control target
= control target key end

     0   :  { %vm41_vm0 = vcmask 261120   ;;  %v1872_v6 = vmov 32.0   ;;  %s1873_s24 = smov 64   ;;  %s1874_s27 = smov 96   ;;  %vm137_vm8 = vcmask 64512   ;;  %vm169_vm9 = vcmask 130048   ;;  %s2390_s0 = inlined_call_operand.vmem [shape: f32[16,32], index: 0, kind: input, shape index: {}]   ;;  %s2391_s5 = inlined_call_operand.vmem [shape: f32[5,1,32], index: 5, kind: input, shape index: {}]   ;;  %s2392_s1 = inlined_call_operand.vmem [shape: f32[2,32,128], index: 1, kind: input, shape index: {}]   ;;  %s2393_s7 = inlined_call_operand.vmem [shape: f32[16,128], index: 7, kind: input, shape index: {}]   ;;  %s2394_s8 = inlined_call_operand.vmem [shape: f32[16,16], index: 8, kind: input, shape index: {}]   ;;  %s2395_s2 = inlined_call_operand.vmem [shape: f32[2,32,32], index: 2, kind: input, shape index: {}]   ;;  %s2396_s3 = inlined_call_operand.vmem [shape: f32[2,32,128], index: 3, kind: input, shape index: {}]   ;;  %s2397_s4 = inlined_call_operand.vmem [shape: f32[2,64,32], index: 4, kind: input, shape index: {}]   ;;  %s2398_s6 = inlined_call_operand.vmem [shape: f32[32,128], index: 6, kind: input, shape index: {}]   ;;  %s2399_s9 = inlined_call_operand.vmem [shape: f32[16,128], index: 9, kind: output, shape index: {}]  }
   0x1   :  { %v1934_v0 = vld [vmem:[%s2390_s0 + $0x8] sm:$0xff]  ;;  %v1941_v2 = vld [vmem:[%s2390_s0] sm:$0xff]  ;;  %1770 = vrcp.f32 %v1872_v6  ;;  %v89_v10 = vld [vmem:[%s2392_s1 + $0x18] sm:$0xff]  ;;  %s1875_s28 = smov 120   ;;  %s1876_s29 = smov 88  }
   0x2   :  { %v40_v1 = vmul.f32 %v1934_v0, %v1934_v0  ;;  %v39_v4 = vmul.f32 %v1941_v2, %v1941_v2  ;;  %1732 = vmatpush.msra.mxu3 %v89_v10  ;;  %108 = vmatpush.msra.mxu0 %v89_v10  ;;  %v88_v11 = vld [vmem:[%s2392_s1 + $0x10] sm:$0xff]  ;;  %v87_v13 = vld [vmem:[%s2392_s1 + $0x8] sm:$0xff]  ;;  %v86_v14 = vld [vmem:[%s2392_s1] sm:$0xff]  ;;  %s1878_s30 = smov 104   ;;  %s1880_s14 = smov 72  }
   0x3   :  { %v1765_v31 = vld [vmem:[%s2391_s5] ss:$0 sm:$0xff]  ;;  %v1973_v42 = vld [vmem:[%s2393_s7 + $0x8] sm:$0xff] }
   0x4   :  { %v45_v3 = vsel %vm41_vm0, %v40_v1, 0.0  ;;  %v42_v5 = vsel %vm41_vm0, %v39_v4, 0.0  ;;  %1733 = vmatpush.msra.mxu3 %v88_v11  ;;  %109 = vmatpush.msra.mxu0 %v88_v11  ;;  %v1983_v45 = vld [vmem:[%s2393_s7] sm:$0xff]  ;;  %s1877_s7 = smov 112  }
   0x5   :  { %46 = vadd.xlane.f32.xlu0 %v45_v3  ;;  %v2019_v62 = vld [vmem:[%s2394_s8] sm:$0xff]  ;;  %v2026_v3 = vld [vmem:[%s2394_s8 + $0x8] sm:$0xff]  ;;  %s1879_s8 = smov 80  }
   0x6   :  { %1734 = vmatpush.msra.mxu3 %v87_v13  ;;  %110 = vmatpush.msra.mxu0 %v87_v13 }
   0x7   :  { %v1771_v7 = vpop.eup %1770 }
   0x8   :  { %v49_v8 = vmul.f32 32.0, %v1771_v7  ;;  %1735 = vmatpush.msra.mxu3 %v86_v14  ;;  %111 = vmatpush.msra.mxu0 %v86_v14  ;;  %vm53_vm1 = vweird.f32 %v1771_v7 }
   0xa   :  { %v50_v9 = vsub.f32 1.0, %v49_v8 }
   0xc   :  { %v51_v12 = vmul.f32 %v1771_v7, %v50_v9 }
   0xd   :  { %43 = vadd.xlane.f32.xlu0 %v42_v5 }
   0xe   :  { %v52_v15 = vadd.f32 %v1771_v7, %v51_v12 }
  0x10   :  { %v1959_v16 = vsel %vm53_vm1, %v1771_v7, %v52_v15 }
  0x78   :  { %v47_v17 = vpop.xlane.xlu0 %46 }
  0x79   :  { %v56_v18 = vmul.f32 %v1959_v16, %v47_v17 }
  0x7b   :  { %v58_v19 = vadd.f32 1e-05, %v56_v18 }
  0x7d   :  { %1772 = vrsqrt.f32 %v58_v19  ;;  %vm75_vm3 = vweird.f32 %v58_v19 }
  0x80   :  { %v44_v20 = vpop.xlane.xlu0 %43 }
  0x81   :  { %v55_v21 = vmul.f32 %v1959_v16, %v44_v20 }
  0x83   :  { %v1773_v22 = vpop.eup %1772  ;;  %v57_v23 = vadd.f32 1e-05, %v55_v21 }
  0x84   :  { %v70_v24 = vmul.f32 %v1773_v22, %v58_v19  ;;  %vm76_vm2 = vweird.f32 %v1773_v22 }
  0x85   :  { %1774 = vrsqrt.f32 %v57_v23  ;;  %vm77_vm4 = vmor %vm75_vm3, %vm76_vm2  ;;  %vm65_vm5 = vweird.f32 %v57_v23 }
  0x86   :  { %v71_v25 = vmul.f32 %v1773_v22, %v70_v24 }
  0x88   :  { %v72_v26 = vmul.f32 0.5, %v71_v25 }
  0x8a   :  { %v73_v27 = vsub.f32 1.5, %v72_v26 }
  0x8b   :  { %v1775_v28 = vpop.eup %1774 }
  0x8c   :  { %v74_v29 = vmul.f32 %v1773_v22, %v73_v27  ;;  %v60_v30 = vmul.f32 %v1775_v28, %v57_v23  ;;  %vm66_vm6 = vweird.f32 %v1775_v28 }
  0x8d   :  { %vm67_vm7 = vmor %vm65_vm5, %vm66_vm6 }
  0x8e   :  { %v61_v32 = vmul.f32 %v1775_v28, %v60_v30  ;;  %v78_v33 = vsel %vm77_vm4, %v1773_v22, %v74_v29 }
  0x8f   :  { %v80_v34 = vmul.f32 %v78_v33, %v1934_v0 }
  0x90   :  { %v62_v35 = vmul.f32 0.5, %v61_v32 }
  0x91   :  { %v85_v36 = vmul.f32 %v1765_v31, %v80_v34 }
  0x92   :  { %v63_v37 = vsub.f32 1.5, %v62_v35 }
  0x93   :  { %1627 = vmatmul.msk.f32.vlgmr.msra.gmra.mxu3 %vm41_vm0, %v85_v36 }
  0x94   :  { %v64_v38 = vmul.f32 %v1775_v28, %v63_v37 }
  0x96   :  { %v68_v39 = vsel %vm67_vm7, %v1775_v28, %v64_v38  ;;  %vm763_vm7 = vcmask 523264  }
  0x97   :  { %v79_v40 = vmul.f32 %v68_v39, %v1941_v2 }
  0x99   :  { %v84_v41 = vmul.f32 %v1765_v31, %v79_v40 }
  0x9b   :  { %1626 = vmatmul.msk.f32.vlgmr.msra.gmra.mxu0 %vm41_vm0, %v84_v41 }
 0x116   :  { %v1975_v43 = vpop.f32.mrf.mxu3 }
 0x117   :  { %v120_v44 = vmul.f32 %v1975_v43, %v1973_v42 }
 0x118   :  { %v1985_v46 = vpop.f32.mrf.mxu0 }
 0x119   :  { %125 = vrot.lane.b32.xlu1 %v120_v44, %s1873_s24  ;;  %v119_v47 = vmul.f32 %v1985_v46, %v1983_v45  ;;  %v2046_v23 = vpack.i.bf16 %v1985_v46, %v1975_v43 }
 0x121   :  { %123 = vrot.lane.b32.xlu1 %v119_v47, %s1873_s24 }
 0x18b   :  { %v126_v48 = vpop.permute.xlu1 %125 }
 0x18c   :  { %v130_v49 = vadd.f32 %v126_v48, %v120_v44 }
 0x18e   :  { %135 = vrot.lane.b32.xlu2 %v130_v49, %s1874_s27  ;;  %174 = vrot.lane.b32.xlu1 %v130_v49, %s1875_s28 }
 0x193   :  { %v124_v50 = vpop.permute.xlu1 %123 }
 0x194   :  { %v129_v51 = vadd.f32 %v124_v50, %v119_v47 }
 0x196   :  { %209 = vrot.lane.b32.xlu1 %v129_v51, %s1876_s29  ;;  %172 = vrot.lane.b32.xlu0 %v129_v51, %s1875_s28 }
 0x197   :  { %133 = vrot.lane.b32.xlu2 %v129_v51, %s1874_s27 }
 0x19e   :  { %207 = vrot.lane.b32.xlu1 %v130_v49, %s1877_s7  ;;  %248 = vrot.lane.b32.xlu0 %v130_v49, %s1878_s30 }
 0x19f   :  { %211 = vrot.lane.b32.xlu2 %v130_v49, %s1876_s29 }
 0x1a7   :  { %205 = vrot.lane.b32.xlu2 %v129_v51, %s1877_s7 }
 0x1af   :  { %246 = vrot.lane.b32.xlu2 %v129_v51, %s1878_s30 }
 0x1e8   :  { %v136_v52 = vpop.permute.xlu2 %135 }
 0x1e9   :  { %1628 = vmatpush.xpose.msk.msra.mxu1 %vm137_vm8, %v136_v52  ;;  %1632 = vmatpush.xpose.msk.msra.mxu2 %vm137_vm8, %v136_v52 }
 0x1f1   :  { %v134_v53 = vpop.permute.xlu2 %133 }
 0x1f2   :  { %1629 = vmatpush.xpose.msk.msra.mxu1 %vm137_vm8, %v134_v53  ;;  %1633 = vmatpush.xpose.msk.msra.mxu2 %vm137_vm8, %v134_v53 }
 0x1f5   :  { %1630 = vmatmul.msk.f32.vlgmr.msra.gmra.mxu1 %vm137_vm8, %v129_v51 }
 0x1f9   :  { %v212_v54 = vpop.permute.xlu2 %211 }
 0x1fa   :  { %1636 = vmatpush.xpose.msk.msrb.mxu3 %vm137_vm8, %v212_v54  ;;  %1640 = vmatpush.xpose.msk.msrb.mxu0 %vm137_vm8, %v212_v54 }
 0x1fd   :  { %1631 = vmatmul.msk.f32.gmra.mxu1 %vm137_vm8, %v130_v49 }
 0x200   :  { %v175_v55 = vpop.permute.xlu1 %174 }
 0x201   :  { %v206_v56 = vpop.permute.xlu2 %205 }
 0x208   :  { %v173_v57 = vpop.permute.xlu0 %172  ;;  %v210_v58 = vpop.permute.xlu1 %209 }
 0x209   :  { %1634 = vmatmul.msk.f32.vlgmr.msra.gmra.mxu2 %vm137_vm8, %v173_v57  ;;  %1637 = vmatpush.xpose.msk.msrb.mxu3 %vm137_vm8, %v210_v58  ;;  %v247_v59 = vpop.permute.xlu2 %246 }
 0x20a   :  { %1641 = vmatpush.xpose.msk.msrb.mxu0 %vm137_vm8, %v210_v58 }
 0x20c   :  { %1638 = vmatmul.msk.f32.vlgmr.msrb.gmra.mxu3 %vm137_vm8, %v206_v56 }
 0x20d   :  { %1642 = vmatmul.msk.f32.vlgmr.msrb.gmra.mxu0 %vm137_vm8, %v247_v59 }
 0x210   :  { %v208_v60 = vpop.permute.xlu1 %207  ;;  %v249_v61 = vpop.permute.xlu0 %248 }
 0x211   :  { %1635 = vmatmul.msk.f32.gmra.mxu2 %vm137_vm8, %v175_v55 }
 0x214   :  { %1639 = vmatmul.msk.f32.gmra.mxu3 %vm137_vm8, %v208_v60 }
 0x215   :  { %1643 = vmatmul.msk.f32.gmra.mxu0 %vm137_vm8, %v249_v61 }
 0x272   :  { %v163_v63 = vpop.f32.mrf.mxu1 }
 0x273   :  { %v164_v1 = vadd.f32 %v163_v63, %v2019_v62 }
 0x275   :  { %170 = vst.msk [vmem:[#allocation2] sm:$0xff] %vm169_vm9, %v164_v1 }
 0x27a   :  { %v166_v4 = vpop.f32.mrf.mxu1 }
 0x27b   :  { %v167_v5 = vadd.f32 %v166_v4, %v2026_v3 }
 0x27c   :  { %v279_v36 = vld [vmem:[#allocation2] sm:$0xff] }
 0x27d   :  { %171 = vst.msk [vmem:[#allocation2 + $0x8] sm:$0xff] %vm169_vm9, %v167_v5  ;;  %v287_v40 = vsel %vm169_vm9, %v279_v36, -inf }
 0x284   :  { %v280_v41 = vld [vmem:[#allocation2 + $0x8] sm:$0xff] }
 0x285   :  { %v290_v44 = vsel %vm169_vm9, %v280_v41, -inf }
 0x28a   :  { %v271_v6 = vpop.f32.mrf.mxu0 }
 0x28b   :  { %v272_v7 = vadd.f32 %v271_v6, %v2019_v62 }
 0x28c   :  { %v197_v8 = vpop.f32.mrf.mxu2 }
 0x28d   :  { %277 = vst.msk [vmem:[#allocation2 + $0x30] sm:$0xff] %vm169_vm9, %v272_v7  ;;  %v198_v9 = vadd.f32 %v197_v8, %v2019_v62 }
 0x28f   :  { %203 = vst.msk [vmem:[#allocation2 + $0x10] sm:$0xff] %vm169_vm9, %v198_v9  ;;  %v238_v10 = vpop.f32.mrf.mxu3 }
 0x290   :  { %v239_v11 = vadd.f32 %v238_v10, %v2019_v62 }
 0x292   :  { %244 = vst.msk [vmem:[#allocation2 + $0x20] sm:$0xff] %vm169_vm9, %v239_v11  ;;  %v274_v12 = vpop.f32.mrf.mxu0 }
 0x293   :  { %v275_v13 = vadd.f32 %v274_v12, %v2026_v3 }
 0x294   :  { %v200_v14 = vpop.f32.mrf.mxu2  ;;  %v285_v47 = vld [vmem:[#allocation2 + $0x30] sm:$0xff] }
 0x295   :  { %278 = vst.msk [vmem:[#allocation2 + $0x38] sm:$0xff] %vm169_vm9, %v275_v13  ;;  %v201_v15 = vadd.f32 %v200_v14, %v2026_v3  ;;  %v305_v49 = vsel %vm169_vm9, %v285_v47, -inf }
 0x296   :  { %v281_v17 = vld [vmem:[#allocation2 + $0x10] sm:$0xff] }
 0x297   :  { %204 = vst.msk [vmem:[#allocation2 + $0x18] sm:$0xff] %vm169_vm9, %v201_v15  ;;  %v241_v18 = vpop.f32.mrf.mxu3  ;;  %v293_v19 = vsel %vm169_vm9, %v281_v17, -inf }
 0x298   :  { %v242_v20 = vadd.f32 %v241_v18, %v2026_v3  ;;  %294 = vmax.xlane.f32.xlu1 %v293_v19 }
 0x299   :  { %v283_v43 = vld [vmem:[#allocation2 + $0x20] sm:$0xff] }
 0x29a   :  { %245 = vst.msk [vmem:[#allocation2 + $0x28] sm:$0xff] %vm169_vm9, %v242_v20  ;;  %v299_v46 = vsel %vm169_vm9, %v283_v43, -inf }
 0x29c   :  { %v2050_v24 = vld [vmem:[#allocation2 + $0x38] sm:$0xff] }
 0x29d   :  { %v308_v25 = vsel %vm169_vm9, %v2050_v24, -inf }
 0x29e   :  { %v282_v21 = vld [vmem:[#allocation2 + $0x18] sm:$0xff] }
 0x29f   :  { %v296_v22 = vsel %vm169_vm9, %v282_v21, -inf }
 0x2a0   :  { %297 = vmax.xlane.f32.xlu2 %v296_v22 }
 0x2a1   :  { %v284_v48 = vld [vmem:[#allocation2 + $0x28] sm:$0xff] }
 0x2a2   :  { %v302_v50 = vsel %vm169_vm9, %v284_v48, -inf }
 0x2b8   :  { %1746 = vrot.lane.b32.xlu2 %v2046_v23, %s1879_s8 }
 0x2e1   :  { %309 = vmax.xlane.f32.xlu2 %v308_v25 }
 0x30b   :  { %v295_v26 = vpop.xlane.xlu1 %294 }
 0x30c   :  { %v313_v27 = vsub.f32 %v281_v17, %v295_v26 }
 0x30e   :  { %v323_v28 = vmul.f32 1.442695, %v313_v27 }
 0x310   :  { %1776 = vpow2.f32 %v323_v28 }
 0x313   :  { %v298_v29 = vpop.xlane.xlu2 %297 }
 0x314   :  { %v314_v30 = vsub.f32 %v282_v21, %v298_v29 }
 0x316   :  { %v1777_v31 = vpop.eup %1776  ;;  %v325_v32 = vmul.f32 1.442695, %v314_v30 }
 0x317   :  { %v341_v33 = vsel %vm169_vm9, %v1777_v31, 0.0 }
 0x318   :  { %1778 = vpow2.f32 %v325_v32  ;;  %342 = vadd.xlane.f32.xlu0 %v341_v33 }
 0x31b   :  { %v1747_v34 = vpop.permute.xlu2 %1746 }
 0x31c   :  { %v1748_v35 = vunpack.i.l.bf16 %v1747_v34  ;;  %v1749_v38 = vunpack.i.h.bf16 %v1747_v34 }
 0x31e   :  { %v1779_v37 = vpop.eup %1778  ;;  %407 = vmatpush.msrb.mxu1 %v1748_v35  ;;  %436 = vmatpush.msrb.mxu2 %v1748_v35 }
 0x31f   :  { %v344_v39 = vsel %vm169_vm9, %v1779_v37, 0.0 }
 0x320   :  { %345 = vadd.xlane.f32.xlu1 %v344_v39  ;;  %408 = vmatpush.msrb.mxu1 %v1749_v38 }
 0x321   :  { %437 = vmatpush.msrb.mxu2 %v1749_v38  ;;  %288 = vmax.xlane.f32.xlu0 %v287_v40 }
 0x328   :  { %291 = vmax.xlane.f32.xlu1 %v290_v44 }
 0x329   :  { %300 = vmax.xlane.f32.xlu0 %v299_v46 }
 0x330   :  { %306 = vmax.xlane.f32.xlu1 %v305_v49 }
 0x331   :  { %303 = vmax.xlane.f32.xlu0 %v302_v50 }
 0x354   :  { %v310_v19 = vpop.xlane.xlu2 %309 }
 0x355   :  { %v318_v21 = vsub.f32 %v2050_v24, %v310_v19  ;;  %v376_v24 = vld [vmem:[%s2395_s2 + $0x8] sm:$0xff] }
 0x356   :  { %466 = vmatpush.msra.mxu3 %v376_v24 }
 0x357   :  { %v333_v25 = vmul.f32 1.442695, %v318_v21 }
 0x38b   :  { %v343_v51 = vpop.xlane.xlu0 %342 }
 0x38c   :  { %1780 = vrcp.f32 %v343_v51 }
 0x392   :  { %v1781_v52 = vpop.eup %1780 }
 0x393   :  { %v346_v53 = vpop.xlane.xlu1 %345  ;;  %v369_v54 = vmul.f32 %v1781_v52, %v1777_v31 }
 0x394   :  { %v289_v55 = vpop.xlane.xlu0 %288  ;;  %1782 = vrcp.f32 %v346_v53 }
 0x395   :  { %v311_v56 = vsub.f32 %v279_v36, %v289_v55  ;;  %1646 = vmatmul.msk.f32.vlgmr.msrb.gmra.mxu2 %vm169_vm9, %v369_v54  ;;  %v375_v54 = vld [vmem:[%s2395_s2] sm:$0xff]  ;;  %v377_v55 = vld [vmem:[%s2395_s2 + $0x10] sm:$0xff] }
 0x396   :  { %495 = vmatpush.msra.mxu0 %v375_v54  ;;  %559 = vmatpush.msra.mxu2 %v377_v55  ;;  %v761_v54 = vld [vmem:[%s2397_s4 + $0x30] sm:$0xff]  ;;  %v760_v55 = vld [vmem:[%s2397_s4 + $0x28] sm:$0xff] }
 0x397   :  { %v319_v57 = vmul.f32 1.442695, %v311_v56 }
 0x399   :  { %1784 = vpow2.f32 %v319_v57  ;;  %v378_v57 = vld [vmem:[%s2395_s2 + $0x18] sm:$0xff] }
 0x39a   :  { %v1783_v58 = vpop.eup %1782  ;;  %619 = vmatpush.msrb.mxu0 %v378_v57  ;;  %v758_v57 = vld [vmem:[%s2397_s4 + $0x18] sm:$0xff] }
 0x39b   :  { %v292_v59 = vpop.xlane.xlu1 %291  ;;  %v370_v60 = vmul.f32 %v1783_v58, %v1779_v37 }
 0x39c   :  { %v301_v61 = vpop.xlane.xlu0 %300  ;;  %v312_v63 = vsub.f32 %v280_v41, %v292_v59 }
 0x39d   :  { %v315_v1 = vsub.f32 %v283_v43, %v301_v61  ;;  %1647 = vmatmul.msk.f32.gmra.mxu2 %vm169_vm9, %v370_v60 }
 0x39e   :  { %v321_v4 = vmul.f32 1.442695, %v312_v63 }
 0x39f   :  { %v1785_v5 = vpop.eup %1784  ;;  %v327_v6 = vmul.f32 1.442695, %v315_v1 }
 0x3a0   :  { %1786 = vpow2.f32 %v321_v4  ;;  %v335_v7 = vsel %vm169_vm9, %v1785_v5, 0.0 }
 0x3a1   :  { %1788 = vpow2.f32 %v327_v6  ;;  %336 = vadd.xlane.f32.xlu1 %v335_v7 }
 0x3a3   :  { %v307_v8 = vpop.xlane.xlu1 %306 }
 0x3a4   :  { %v304_v9 = vpop.xlane.xlu0 %303  ;;  %v317_v10 = vsub.f32 %v285_v47, %v307_v8 }
 0x3a5   :  { %v316_v12 = vsub.f32 %v284_v48, %v304_v9 }
 0x3a6   :  { %v1787_v11 = vpop.eup %1786  ;;  %v331_v13 = vmul.f32 1.442695, %v317_v10 }
 0x3a7   :  { %v1789_v14 = vpop.eup %1788  ;;  %v338_v15 = vsel %vm169_vm9, %v1787_v11, 0.0  ;;  %v329_v18 = vmul.f32 1.442695, %v316_v12 }
 0x3a8   :  { %1790 = vpow2.f32 %v331_v13  ;;  %v347_v17 = vsel %vm169_vm9, %v1789_v14, 0.0  ;;  %339 = vadd.xlane.f32.xlu0 %v338_v15 }
 0x3a9   :  { %348 = vadd.xlane.f32.xlu1 %v347_v17  ;;  %1792 = vpow2.f32 %v329_v18 }
 0x3aa   :  { %1794 = vpow2.f32 %v333_v25  ;;  %v675_v25 = vld [vmem:[%s2396_s3 + $0x18] sm:$0xff] }
 0x3ae   :  { %v1791_v20 = vpop.eup %1790 }
 0x3af   :  { %v353_v22 = vsel %vm169_vm9, %v1791_v20, 0.0  ;;  %v1793_v26 = vpop.eup %1792 }
 0x3b0   :  { %354 = vadd.xlane.f32.xlu0 %v353_v22  ;;  %v350_v27 = vsel %vm169_vm9, %v1793_v26, 0.0  ;;  %v1795_v28 = vpop.eup %1794 }
 0x3b1   :  { %v356_v29 = vsel %vm169_vm9, %v1795_v28, 0.0 }
 0x3b8   :  { %351 = vadd.xlane.f32.xlu0 %v350_v27  ;;  %v672_v27 = vld [vmem:[%s2396_s3] sm:$0xff] }
 0x3c0   :  { %357 = vadd.xlane.f32.xlu0 %v356_v29 }
 0x3c2   :  { %1751 = vrot.lane.b32.xlu1 %v2046_v23, %s1880_s14 }
 0x414   :  { %v337_v30 = vpop.xlane.xlu1 %336 }
 0x415   :  { %1796 = vrcp.f32 %v337_v30 }
 0x418   :  { %v439_v31 = vpop.f32.mrf.mxu2 }
 0x419   :  { %1648 = vmatmul.msk.f32.vlgmr.msra.gmra.mxu3 %vm137_vm8, %v439_v31 }
 0x41b   :  { %v1797_v32 = vpop.eup %1796  ;;  %v340_v33 = vpop.xlane.xlu0 %339 }
 0x41c   :  { %1798 = vrcp.f32 %v340_v33  ;;  %v367_v34 = vmul.f32 %v1797_v32, %v1785_v5  ;;  %v349_v38 = vpop.xlane.xlu1 %348 }
 0x41d   :  { %1800 = vrcp.f32 %v349_v38 }
 0x41e   :  { %1644 = vmatmul.msk.f32.vlgmr.msrb.gmra.mxu1 %vm169_vm9, %v367_v34 }
 0x420   :  { %v442_v35 = vpop.f32.mrf.mxu2 }
 0x421   :  { %1649 = vmatmul.msk.f32.gmra.mxu3 %vm137_vm8, %v442_v35 }
 0x422   :  { %v1799_v23 = vpop.eup %1798 }
 0x423   :  { %v355_v36 = vpop.xlane.xlu0 %354  ;;  %v368_v37 = vmul.f32 %v1799_v23, %v1787_v11  ;;  %v1801_v40 = vpop.eup %1800 }
 0x424   :  { %1802 = vrcp.f32 %v355_v36  ;;  %v371_v48 = vmul.f32 %v1801_v40, %v1789_v14  ;;  %v1766_v40 = vld [vmem:[%s2391_s5 + $0x1] ss:$0 sm:$0xff] }
 0x426   :  { %1645 = vmatmul.msk.f32.gmra.mxu1 %vm169_vm9, %v368_v37 }
 0x42a   :  { %v1803_v44 = vpop.eup %1802 }
 0x42b   :  { %v352_v39 = vpop.xlane.xlu0 %351  ;;  %v373_v49 = vmul.f32 %v1803_v44, %v1791_v20 }
 0x42c   :  { %1804 = vrcp.f32 %v352_v39 }
 0x432   :  { %v1805_v50 = vpop.eup %1804 }
 0x433   :  { %v358_v41 = vpop.xlane.xlu0 %357  ;;  %v372_v52 = vmul.f32 %v1805_v50, %v1793_v26  ;;  %v674_v26 = vld [vmem:[%s2396_s3 + $0x10] sm:$0xff] }
 0x434   :  { %v1752_v43 = vpop.permute.xlu1 %1751  ;;  %1806 = vrcp.f32 %v358_v41 }
 0x435   :  { %v1753_v46 = vunpack.i.l.bf16 %v1752_v43  ;;  %v1754_v47 = vunpack.i.h.bf16 %v1752_v43 }
 0x437   :  { %529 = vmatpush.msra.mxu1 %v1753_v46  ;;  %589 = vmatpush.msrb.mxu3 %v1753_v46 }
 0x439   :  { %530 = vmatpush.msra.mxu1 %v1754_v47  ;;  %590 = vmatpush.msrb.mxu3 %v1754_v47 }
 0x43a   :  { %1652 = vmatmul.msk.f32.vlgmr.msra.gmra.mxu1 %vm169_vm9, %v371_v48  ;;  %1656 = vmatmul.msk.f32.vlgmr.msrb.gmra.mxu3 %vm169_vm9, %v373_v49  ;;  %v1807_v51 = vpop.eup %1806 }
 0x43b   :  { %v374_v53 = vmul.f32 %v1807_v51, %v1795_v28  ;;  %694 = vmatpush.msrb.mxu1 %v675_v25 }
 0x43d   :  { %695 = vmatpush.msrb.mxu1 %v674_v26 }
 0x442   :  { %1653 = vmatmul.msk.f32.gmra.mxu1 %vm169_vm9, %v372_v52  ;;  %1657 = vmatmul.msk.f32.gmra.mxu3 %vm169_vm9, %v374_v53  ;;  %v762_v53 = vld [vmem:[%s2397_s4 + $0x38] sm:$0xff] }
 0x443   :  { %778 = vmatpush.msrb.mxu2 %v762_v53 }
 0x445   :  { %779 = vmatpush.msrb.mxu2 %v761_v54 }
 0x447   :  { %780 = vmatpush.msrb.mxu2 %v760_v55 }
 0x49b   :  { %v410_v56 = vpop.f32.mrf.mxu1 }
 0x49c   :  { %1650 = vmatmul.msk.f32.vlgmr.msra.gmra.mxu0 %vm137_vm8, %v410_v56  ;;  %v468_v59 = vpop.f32.mrf.mxu3  ;;  %v759_v56 = vld [vmem:[%s2397_s4 + $0x20] sm:$0xff] }
 0x49d   :  { %781 = vmatpush.msrb.mxu2 %v759_v56 }
 0x49f   :  { %782 = vmatpush.msrb.mxu2 %v758_v57 }
 0x4a3   :  { %v413_v58 = vpop.f32.mrf.mxu1 }
 0x4a4   :  { %1651 = vmatmul.msk.f32.gmra.mxu0 %vm137_vm8, %v413_v58  ;;  %v471_v60 = vpop.f32.mrf.mxu3  ;;  %v757_v58 = vld [vmem:[%s2397_s4 + $0x10] sm:$0xff] }
 0x4a5   :  { %783 = vmatpush.msrb.mxu2 %v757_v58 }
 0x4b7   :  { %v532_v61 = vpop.f32.mrf.mxu1 }
 0x4b8   :  { %1654 = vmatmul.msk.f32.vlgmr.msra.gmra.mxu2 %vm137_vm8, %v532_v61 }
 0x4bd   :  { %v592_v63 = vpop.f32.mrf.mxu3 }
 0x4be   :  { %1658 = vmatmul.msk.f32.vlgmr.msrb.gmra.mxu0 %vm137_vm8, %v592_v63 }
 0x4bf   :  { %v535_v1 = vpop.f32.mrf.mxu1 }
 0x4c0   :  { %1655 = vmatmul.msk.f32.gmra.mxu2 %vm137_vm8, %v535_v1 }
 0x4c5   :  { %v595_v4 = vpop.f32.mrf.mxu3 }
 0x4c6   :  { %1659 = vmatmul.msk.f32.gmra.mxu0 %vm137_vm8, %v595_v4 }
 0x519   :  { %v497_v5 = vpop.f32.mrf.mxu0 }
 0x51a   :  { %v498_v7 = vadd.f32 %v497_v5, %v468_v59  ;;  %v756_v59 = vld [vmem:[%s2397_s4 + $0x8] sm:$0xff] }
 0x51b   :  { %784 = vmatpush.msrb.mxu2 %v756_v59 }
 0x521   :  { %v500_v6 = vpop.f32.mrf.mxu0 }
 0x522   :  { %v501_v13 = vadd.f32 %v500_v6, %v471_v60 }
 0x53b   :  { %v561_v8 = vpop.f32.mrf.mxu2  ;;  %v621_v9 = vpop.f32.mrf.mxu0 }
 0x53c   :  { %v567_v10 = vadd.f32 %v561_v8, %v498_v7  ;;  %v755_v7 = vld [vmem:[%s2397_s4] sm:$0xff] }
 0x53d   :  { %785 = vmatpush.msrb.mxu2 %v755_v7 }
 0x53e   :  { %v627_v11 = vadd.f32 %v621_v9, %v567_v10 }
 0x540   :  { %v2099_v12 = vadd.f32 %v627_v11, %v1941_v2 }
 0x542   :  { %v633_v14 = vmul.f32 %v2099_v12, %v2099_v12 }
 0x543   :  { %v564_v15 = vpop.f32.mrf.mxu2  ;;  %v624_v19 = vpop.f32.mrf.mxu0 }
 0x544   :  { %v568_v17 = vadd.f32 %v564_v15, %v501_v13  ;;  %v635_v18 = vsel %vm41_vm0, %v633_v14, 0.0 }
 0x545   :  { %636 = vadd.xlane.f32.xlu0 %v635_v18 }
 0x546   :  { %v628_v20 = vadd.f32 %v624_v19, %v568_v17 }
 0x548   :  { %v2105_v21 = vadd.f32 %v628_v20, %v1934_v0  ;;  %v673_v0 = vld [vmem:[%s2396_s3 + $0x8] sm:$0xff] }
 0x549   :  { %696 = vmatpush.msrb.mxu1 %v673_v0 }
 0x54a   :  { %v634_v22 = vmul.f32 %v2105_v21, %v2105_v21 }
 0x54b   :  { %697 = vmatpush.msrb.mxu1 %v672_v27 }
 0x54c   :  { %v638_v2 = vsel %vm41_vm0, %v634_v22, 0.0 }
 0x54d   :  { %639 = vadd.xlane.f32.xlu2 %v638_v2 }
 0x5b8   :  { %v637_v28 = vpop.xlane.xlu0 %636 }
 0x5b9   :  { %v641_v29 = vmul.f32 %v637_v28, %v1959_v16 }
 0x5bb   :  { %v643_v24 = vadd.f32 1e-05, %v641_v29 }
 0x5bd   :  { %1808 = vrsqrt.f32 %v643_v24  ;;  %vm651_vm11 = vweird.f32 %v643_v24 }
 0x5c0   :  { %v640_v30 = vpop.xlane.xlu2 %639 }
 0x5c1   :  { %v642_v31 = vmul.f32 %v640_v30, %v1959_v16 }
 0x5c3   :  { %v1809_v32 = vpop.eup %1808  ;;  %v644_v33 = vadd.f32 1e-05, %v642_v31 }
 0x5c4   :  { %v646_v34 = vmul.f32 %v1809_v32, %v643_v24  ;;  %vm652_vm10 = vweird.f32 %v1809_v32 }
 0x5c5   :  { %1810 = vrsqrt.f32 %v644_v33  ;;  %vm653_vm12 = vmor %vm651_vm11, %vm652_vm10  ;;  %vm661_vm14 = vweird.f32 %v644_v33 }
 0x5c6   :  { %v647_v35 = vmul.f32 %v1809_v32, %v646_v34 }
 0x5c8   :  { %v648_v23 = vmul.f32 0.5, %v647_v35 }
 0x5ca   :  { %v649_v36 = vsub.f32 1.5, %v648_v23 }
 0x5cb   :  { %v1811_v37 = vpop.eup %1810 }
 0x5cc   :  { %v650_v38 = vmul.f32 %v1809_v32, %v649_v36  ;;  %v656_v39 = vmul.f32 %v1811_v37, %v644_v33  ;;  %vm662_vm13 = vweird.f32 %v1811_v37 }
 0x5cd   :  { %vm663_vm15 = vmor %vm661_vm14, %vm662_vm13 }
 0x5ce   :  { %v654_v41 = vsel %vm653_vm12, %v1809_v32, %v650_v38  ;;  %v657_v43 = vmul.f32 %v1811_v37, %v656_v39 }
 0x5cf   :  { %v665_v44 = vmul.f32 %v654_v41, %v2099_v12 }
 0x5d0   :  { %v658_v46 = vmul.f32 0.5, %v657_v43 }
 0x5d1   :  { %v670_v47 = vmul.f32 %v1766_v40, %v665_v44 }
 0x5d2   :  { %v659_v48 = vsub.f32 1.5, %v658_v46  ;;  %v1670_v46 = vld [vmem:[%s2392_s1 + $0x30] sm:$0xff] }
 0x5d3   :  { %1661 = vmatmul.msk.f32.vlgmr.msrb.gmra.mxu1 %vm41_vm0, %v670_v47  ;;  %v1668_v47 = vld [vmem:[%s2392_s1 + $0x20] sm:$0xff] }
 0x5d4   :  { %v660_v49 = vmul.f32 %v1811_v37, %v659_v48 }
 0x5d6   :  { %v664_v50 = vsel %vm663_vm15, %v1811_v37, %v660_v49 }
 0x5d7   :  { %v666_v51 = vmul.f32 %v664_v50, %v2105_v21 }
 0x5d9   :  { %v671_v52 = vmul.f32 %v1766_v40, %v666_v51 }
 0x5db   :  { %1662 = vmatmul.msk.f32.gmra.mxu1 %vm41_vm0, %v671_v52 }
 0x650   :  { %v699_v60 = vpop.f32.mrf.mxu1 }
 0x651   :  { %747 = vrot.lane.b32.xlu1 %v699_v60, %s1873_s24  ;;  %v1663_v63 = vmul.f32 -1.442695, %v699_v60 }
 0x653   :  { %1812 = vpow2.f32 %v1663_v63  ;;  %v1767_v63 = vld [vmem:[%s2391_s5 + $0x2] ss:$0 sm:$0xff] }
 0x658   :  { %v702_v61 = vpop.f32.mrf.mxu1 }
 0x659   :  { %749 = vrot.lane.b32.xlu0 %v702_v61, %s1873_s24  ;;  %v1664_v1 = vmul.f32 -1.442695, %v702_v61  ;;  %v1813_v4 = vpop.eup %1812 }
 0x65a   :  { %v711_v5 = vadd.f32 1.0, %v1813_v4 }
 0x65b   :  { %1814 = vpow2.f32 %v1664_v1 }
 0x65c   :  { %1816 = vrcp.f32 %v711_v5  ;;  %v724_v19 = vand.u32 2147483648, %v711_v5  ;;  %vm718_vm2 = vweird.f32 %v711_v5  ;;  %v722_v20 = vand.u32 2147483647, %v711_v5 }
 0x65e   :  { %v725_v25 = vor.u32 1.1754944e-38, %v724_v19  ;;  %vm723_vm4 = vcmp.eq.f32.partialorder %v722_v20, 8.507059e+37 }
 0x661   :  { %v1815_v6 = vpop.eup %1814 }
 0x662   :  { %v712_v8 = vadd.f32 1.0, %v1815_v6  ;;  %v1817_v9 = vpop.eup %1816 }
 0x663   :  { %v714_v10 = vmul.f32 %v1817_v9, %v711_v5  ;;  %vm719_vm1 = vweird.f32 %v1817_v9 }
 0x664   :  { %1818 = vrcp.f32 %v712_v8  ;;  %vm720_vm3 = vmor %vm718_vm2, %vm719_vm1  ;;  %v739_v27 = vand.u32 2147483648, %v712_v8  ;;  %vm733_vm6 = vweird.f32 %v712_v8  ;;  %v737_v29 = vand.u32 2147483647, %v712_v8 }
 0x665   :  { %v715_v11 = vsub.f32 1.0, %v714_v10 }
 0x666   :  { %v740_v32 = vor.u32 1.1754944e-38, %v739_v27  ;;  %vm738_vm11 = vcmp.eq.f32.partialorder %v737_v29, 8.507059e+37 }
 0x667   :  { %v716_v14 = vmul.f32 %v1817_v9, %v715_v11 }
 0x669   :  { %v717_v17 = vadd.f32 %v1817_v9, %v716_v14 }
 0x66a   :  { %v1819_v13 = vpop.eup %1818 }
 0x66b   :  { %v729_v15 = vmul.f32 %v1819_v13, %v712_v8  ;;  %v721_v22 = vsel %vm720_vm3, %v1817_v9, %v717_v17  ;;  %vm734_vm5 = vweird.f32 %v1819_v13 }
 0x66c   :  { %v726_v26 = vsel %vm723_vm4, %v725_v25, %v721_v22  ;;  %vm735_vm10 = vmor %vm733_vm6, %vm734_vm5 }
 0x66d   :  { %v730_v18 = vsub.f32 1.0, %v729_v15  ;;  %v743_v28 = vmul.f32 %v726_v26, %v699_v60 }
 0x66f   :  { %v731_v2 = vmul.f32 %v1819_v13, %v730_v18 }
 0x671   :  { %v732_v0 = vadd.f32 %v1819_v13, %v731_v2 }
 0x673   :  { %v736_v31 = vsel %vm735_vm10, %v1819_v13, %v732_v0 }
 0x674   :  { %v741_v33 = vsel %vm738_vm11, %v740_v32, %v736_v31 }
 0x675   :  { %v744_v34 = vmul.f32 %v741_v33, %v702_v61 }
 0x6c3   :  { %v748_v24 = vpop.permute.xlu1 %747 }
 0x6c4   :  { %v753_v30 = vmul.f32 %v748_v24, %v743_v28 }
 0x6c6   :  { %1665 = vmatmul.msk.f32.vlgmr.msrb.gmra.mxu2 %vm763_vm7, %v753_v30 }
 0x6cb   :  { %v750_v35 = vpop.permute.xlu0 %749 }
 0x6cc   :  { %v754_v23 = vmul.f32 %v750_v35, %v744_v34 }
 0x6ce   :  { %1666 = vmatmul.msk.f32.gmra.mxu2 %vm763_vm7, %v754_v23 }
 0x749   :  { %v787_v36 = vpop.f32.mrf.mxu2 }
 0x74a   :  { %v2160_v37 = vadd.f32 %v787_v36, %v2099_v12  ;;  %v1671_v12 = vld [vmem:[%s2392_s1 + $0x38] sm:$0xff] }
 0x74b   :  { %859 = vmatpush.msra.mxu3 %v1671_v12 }
 0x74c   :  { %v797_v38 = vmul.f32 %v2160_v37, %v2160_v37 }
 0x74d   :  { %860 = vmatpush.msra.mxu3 %v1670_v46 }
 0x74e   :  { %v799_v39 = vsel %vm41_vm0, %v797_v38, 0.0 }
 0x74f   :  { %800 = vadd.xlane.f32.xlu2 %v799_v39 }
 0x751   :  { %v790_v40 = vpop.f32.mrf.mxu2 }
 0x752   :  { %v2166_v41 = vadd.f32 %v790_v40, %v2105_v21  ;;  %v1669_v21 = vld [vmem:[%s2392_s1 + $0x28] sm:$0xff] }
 0x753   :  { %861 = vmatpush.msra.mxu3 %v1669_v21 }
 0x754   :  { %v798_v43 = vmul.f32 %v2166_v41, %v2166_v41 }
 0x755   :  { %862 = vmatpush.msra.mxu3 %v1668_v47 }
 0x756   :  { %v802_v44 = vsel %vm41_vm0, %v798_v43, 0.0 }
 0x757   :  { %803 = vadd.xlane.f32.xlu1 %v802_v44 }
 0x7c2   :  { %v801_v48 = vpop.xlane.xlu2 %800 }
 0x7c3   :  { %v805_v49 = vmul.f32 %v801_v48, %v1959_v16 }
 0x7c5   :  { %v807_v50 = vadd.f32 1e-05, %v805_v49 }
 0x7c7   :  { %1820 = vrsqrt.f32 %v807_v50  ;;  %vm815_vm13 = vweird.f32 %v807_v50 }
 0x7ca   :  { %v804_v51 = vpop.xlane.xlu1 %803 }
 0x7cb   :  { %v806_v52 = vmul.f32 %v804_v51, %v1959_v16 }
 0x7cd   :  { %v1821_v53 = vpop.eup %1820  ;;  %v808_v54 = vadd.f32 1e-05, %v806_v52 }
 0x7ce   :  { %v810_v55 = vmul.f32 %v1821_v53, %v807_v50  ;;  %vm816_vm12 = vweird.f32 %v1821_v53 }
 0x7cf   :  { %1822 = vrsqrt.f32 %v808_v54  ;;  %vm817_vm14 = vmor %vm815_vm13, %vm816_vm12  ;;  %vm825_vm1 = vweird.f32 %v808_v54 }
 0x7d0   :  { %v811_v56 = vmul.f32 %v1821_v53, %v810_v55 }
 0x7d2   :  { %v812_v57 = vmul.f32 0.5, %v811_v56 }
 0x7d4   :  { %v813_v58 = vsub.f32 1.5, %v812_v57 }
 0x7d5   :  { %v1823_v59 = vpop.eup %1822 }
 0x7d6   :  { %v814_v60 = vmul.f32 %v1821_v53, %v813_v58  ;;  %v820_v61 = vmul.f32 %v1823_v59, %v808_v54  ;;  %vm826_vm15 = vweird.f32 %v1823_v59 }
 0x7d7   :  { %vm827_vm2 = vmor %vm825_vm1, %vm826_vm15 }
 0x7d8   :  { %v818_v1 = vsel %vm817_vm14, %v1821_v53, %v814_v60  ;;  %v821_v4 = vmul.f32 %v1823_v59, %v820_v61 }
 0x7d9   :  { %v829_v5 = vmul.f32 %v818_v1, %v2160_v37 }
 0x7da   :  { %v822_v6 = vmul.f32 0.5, %v821_v4 }
 0x7db   :  { %v834_v7 = vmul.f32 %v1767_v63, %v829_v5 }
 0x7dc   :  { %v823_v8 = vsub.f32 1.5, %v822_v6 }
 0x7dd   :  { %1672 = vmatmul.msk.f32.vlgmr.msra.gmra.mxu3 %vm41_vm0, %v834_v7 }
 0x7de   :  { %v824_v9 = vmul.f32 %v1823_v59, %v823_v8 }
 0x7e0   :  { %v828_v10 = vsel %vm827_vm2, %v1823_v59, %v824_v9 }
 0x7e1   :  { %v830_v11 = vmul.f32 %v828_v10, %v2166_v41 }
 0x7e3   :  { %v835_v13 = vmul.f32 %v1767_v63, %v830_v11 }
 0x7e5   :  { %1673 = vmatmul.msk.f32.gmra.mxu3 %vm41_vm0, %v835_v13 }
 0x860   :  { %v2192_v14 = vpop.f32.mrf.mxu3 }
 0x861   :  { %v870_v15 = vmul.f32 %v2192_v14, %v1983_v45 }
 0x863   :  { %874 = vrot.lane.b32.xlu0 %v870_v15, %s1873_s24 }
 0x868   :  { %v2197_v17 = vpop.f32.mrf.mxu3 }
 0x869   :  { %v871_v18 = vmul.f32 %v2197_v17, %v1973_v42  ;;  %v2248_v52 = vpack.i.bf16 %v2192_v14, %v2197_v17 }
 0x86b   :  { %876 = vrot.lane.b32.xlu2 %v871_v18, %s1873_s24 }
 0x8c5   :  { %v877_v19 = vpop.permute.xlu2 %876 }
 0x8c6   :  { %v881_v20 = vadd.f32 %v877_v19, %v871_v18 }
 0x8c8   :  { %886 = vrot.lane.b32.xlu0 %v881_v20, %s1874_s27 }
 0x8d5   :  { %v875_v22 = vpop.permute.xlu0 %874 }
 0x8d6   :  { %v880_v2 = vadd.f32 %v875_v22, %v870_v15 }
 0x8d8   :  { %958 = vrot.lane.b32.xlu1 %v880_v2, %s1876_s29  ;;  %921 = vrot.lane.b32.xlu2 %v880_v2, %s1875_s28 }
 0x8d9   :  { %884 = vrot.lane.b32.xlu0 %v880_v2, %s1874_s27 }
 0x8e0   :  { %960 = vrot.lane.b32.xlu2 %v881_v20, %s1876_s29 }
 0x8e1   :  { %923 = vrot.lane.b32.xlu0 %v881_v20, %s1875_s28 }
 0x8e8   :  { %997 = vrot.lane.b32.xlu2 %v881_v20, %s1878_s30 }
 0x8e9   :  { %995 = vrot.lane.b32.xlu0 %v880_v2, %s1878_s30 }
 0x8f0   :  { %956 = vrot.lane.b32.xlu2 %v881_v20, %s1877_s7 }
 0x8f1   :  { %954 = vrot.lane.b32.xlu0 %v880_v2, %s1877_s7 }
 0x932   :  { %v922_v42 = vpop.permute.xlu2 %921 }
 0x93a   :  { %v887_v45 = vpop.permute.xlu0 %886  ;;  %v961_v25 = vpop.permute.xlu2 %960 }
 0x93b   :  { %1674 = vmatpush.xpose.msk.msra.mxu0 %vm137_vm8, %v887_v45  ;;  %1678 = vmatpush.xpose.msk.msra.mxu1 %vm137_vm8, %v887_v45 }
 0x93c   :  { %1682 = vmatpush.xpose.msk.msra.mxu2 %vm137_vm8, %v961_v25  ;;  %1686 = vmatpush.xpose.msk.msrb.mxu3 %vm137_vm8, %v961_v25 }
 0x942   :  { %v998_v29 = vpop.permute.xlu2 %997 }
 0x94a   :  { %v959_v26 = vpop.permute.xlu1 %958  ;;  %v957_v30 = vpop.permute.xlu2 %956 }
 0x94b   :  { %v885_v0 = vpop.permute.xlu0 %884  ;;  %1683 = vmatpush.xpose.msk.msra.mxu2 %vm137_vm8, %v959_v26  ;;  %1687 = vmatpush.xpose.msk.msrb.mxu3 %vm137_vm8, %v959_v26 }
 0x94c   :  { %1675 = vmatpush.xpose.msk.msra.mxu0 %vm137_vm8, %v885_v0  ;;  %1679 = vmatpush.xpose.msk.msra.mxu1 %vm137_vm8, %v885_v0 }
 0x94f   :  { %1676 = vmatmul.msk.f32.vlgmr.msra.gmra.mxu0 %vm137_vm8, %v880_v2  ;;  %1680 = vmatmul.msk.f32.vlgmr.msra.gmra.mxu1 %vm137_vm8, %v922_v42 }
 0x953   :  { %v924_v27 = vpop.permute.xlu0 %923 }
 0x957   :  { %1677 = vmatmul.msk.f32.gmra.mxu0 %vm137_vm8, %v881_v20  ;;  %1681 = vmatmul.msk.f32.gmra.mxu1 %vm137_vm8, %v924_v27 }
 0x95b   :  { %v996_v28 = vpop.permute.xlu0 %995 }
 0x95c   :  { %1688 = vmatmul.msk.f32.vlgmr.msrb.gmra.mxu3 %vm137_vm8, %v996_v28 }
 0x963   :  { %v955_v24 = vpop.permute.xlu0 %954 }
 0x964   :  { %1684 = vmatmul.msk.f32.vlgmr.msra.gmra.mxu2 %vm137_vm8, %v955_v24  ;;  %1689 = vmatmul.msk.f32.gmra.mxu3 %vm137_vm8, %v998_v29 }
 0x96c   :  { %1685 = vmatmul.msk.f32.gmra.mxu2 %vm137_vm8, %v957_v30 }
 0x9cc   :  { %v913_v31 = vpop.f32.mrf.mxu0  ;;  %v946_v32 = vpop.f32.mrf.mxu1 }
 0x9cd   :  { %v914_v33 = vadd.f32 %v913_v31, %v2019_v62  ;;  %v947_v34 = vadd.f32 %v946_v32, %v2019_v62 }
 0x9cf   :  { %919 = vst.msk [vmem:[#allocation2] sm:$0xff] %vm169_vm9, %v914_v33 }
 0x9d0   :  { %952 = vst.msk [vmem:[#allocation2 + $0x10] sm:$0xff] %vm169_vm9, %v947_v34 }
 0x9d4   :  { %v916_v35 = vpop.f32.mrf.mxu0  ;;  %v949_v23 = vpop.f32.mrf.mxu1 }
 0x9d5   :  { %v917_v36 = vadd.f32 %v916_v35, %v2026_v3  ;;  %v950_v38 = vadd.f32 %v949_v23, %v2026_v3 }
 0x9d6   :  { %v1028_v1 = vld [vmem:[#allocation2] sm:$0xff] }
 0x9d7   :  { %920 = vst.msk [vmem:[#allocation2 + $0x8] sm:$0xff] %vm169_vm9, %v917_v36  ;;  %v1030_v39 = vld [vmem:[#allocation2 + $0x10] sm:$0xff]  ;;  %v1036_v6 = vsel %vm169_vm9, %v1028_v1, -inf }
 0x9d8   :  { %953 = vst.msk [vmem:[#allocation2 + $0x18] sm:$0xff] %vm169_vm9, %v950_v38  ;;  %v1042_v40 = vsel %vm169_vm9, %v1030_v39, -inf }
 0x9d9   :  { %1043 = vmax.xlane.f32.xlu0 %v1042_v40 }
 0x9de   :  { %v1029_v9 = vld [vmem:[#allocation2 + $0x8] sm:$0xff] }
 0x9df   :  { %v1020_v43 = vpop.f32.mrf.mxu3  ;;  %v1031_v44 = vld [vmem:[#allocation2 + $0x18] sm:$0xff]  ;;  %v1039_v11 = vsel %vm169_vm9, %v1029_v9, -inf }
 0x9e0   :  { %v1021_v12 = vadd.f32 %v1020_v43, %v2019_v62  ;;  %v1045_v46 = vsel %vm169_vm9, %v1031_v44, -inf }
 0x9e1   :  { %1046 = vmax.xlane.f32.xlu2 %v1045_v46 }
 0x9e2   :  { %1026 = vst.msk [vmem:[#allocation2 + $0x30] sm:$0xff] %vm169_vm9, %v1021_v12 }
 0x9e7   :  { %v987_v21 = vpop.f32.mrf.mxu2  ;;  %v1023_v47 = vpop.f32.mrf.mxu3 }
 0x9e8   :  { %v988_v48 = vadd.f32 %v987_v21, %v2019_v62  ;;  %v1024_v49 = vadd.f32 %v1023_v47, %v2026_v3 }
 0x9e9   :  { %v1034_v8 = vld [vmem:[#allocation2 + $0x30] sm:$0xff] }
 0x9ea   :  { %993 = vst.msk [vmem:[#allocation2 + $0x20] sm:$0xff] %vm169_vm9, %v988_v48  ;;  %v1054_v10 = vsel %vm169_vm9, %v1034_v8, -inf }
 0x9eb   :  { %1027 = vst.msk [vmem:[#allocation2 + $0x38] sm:$0xff] %vm169_vm9, %v1024_v49 }
 0x9ef   :  { %v990_v50 = vpop.f32.mrf.mxu2 }
 0x9f0   :  { %v991_v51 = vadd.f32 %v990_v50, %v2026_v3 }
 0x9f1   :  { %v1032_v13 = vld [vmem:[#allocation2 + $0x20] sm:$0xff] }
 0x9f2   :  { %994 = vst.msk [vmem:[#allocation2 + $0x28] sm:$0xff] %vm169_vm9, %v991_v51  ;;  %v1035_v14 = vld [vmem:[#allocation2 + $0x38] sm:$0xff]  ;;  %v1048_v15 = vsel %vm169_vm9, %v1032_v13, -inf }
 0x9f3   :  { %v1057_v17 = vsel %vm169_vm9, %v1035_v14, -inf }
 0x9f9   :  { %1756 = vrot.lane.b32.xlu2 %v2248_v52, %s1879_s8  ;;  %v2252_v53 = vld [vmem:[#allocation2 + $0x28] sm:$0xff] }
 0x9fa   :  { %v1051_v62 = vsel %vm169_vm9, %v2252_v53, -inf }
 0xa22   :  { %1052 = vmax.xlane.f32.xlu2 %v1051_v62 }
 0xa4c   :  { %v1044_v54 = vpop.xlane.xlu0 %1043 }
 0xa4d   :  { %v1062_v55 = vsub.f32 %v1030_v39, %v1044_v54 }
 0xa4f   :  { %v1072_v56 = vmul.f32 1.442695, %v1062_v55 }
 0xa51   :  { %1824 = vpow2.f32 %v1072_v56 }
 0xa54   :  { %v1047_v3 = vpop.xlane.xlu2 %1046 }
 0xa55   :  { %v1063_v57 = vsub.f32 %v1031_v44, %v1047_v3 }
 0xa57   :  { %v1825_v58 = vpop.eup %1824  ;;  %v1074_v59 = vmul.f32 1.442695, %v1063_v57 }
 0xa58   :  { %v1090_v60 = vsel %vm169_vm9, %v1825_v58, 0.0 }
 0xa59   :  { %1826 = vpow2.f32 %v1074_v59  ;;  %1091 = vadd.xlane.f32.xlu1 %v1090_v60 }
 0xa5c   :  { %v1757_v61 = vpop.permute.xlu2 %1756 }
 0xa5d   :  { %v1758_v63 = vunpack.i.l.bf16 %v1757_v61  ;;  %v1759_v5 = vunpack.i.h.bf16 %v1757_v61 }
 0xa5f   :  { %v1827_v4 = vpop.eup %1826  ;;  %1157 = vmatpush.msrb.mxu0 %v1758_v63  ;;  %1186 = vmatpush.msrb.mxu1 %v1758_v63 }
 0xa60   :  { %v1093_v7 = vsel %vm169_vm9, %v1827_v4, 0.0 }
 0xa61   :  { %1037 = vmax.xlane.f32.xlu1 %v1036_v6  ;;  %1094 = vadd.xlane.f32.xlu0 %v1093_v7 }
 0xa62   :  { %1158 = vmatpush.msrb.mxu0 %v1759_v5  ;;  %1187 = vmatpush.msrb.mxu1 %v1759_v5 }
 0xa69   :  { %1055 = vmax.xlane.f32.xlu1 %v1054_v10  ;;  %1040 = vmax.xlane.f32.xlu0 %v1039_v11 }
 0xa71   :  { %1049 = vmax.xlane.f32.xlu1 %v1048_v15  ;;  %1058 = vmax.xlane.f32.xlu0 %v1057_v17  ;;  %v1690_v17 = vld [vmem:[%s2395_s2 + $0x20] sm:$0xff] }
 0xa72   :  { %1245 = vmatpush.msra.mxu3 %v1690_v17  ;;  %v1723_v17 = vld [vmem:[%s2397_s4 + $0x60] sm:$0xff] }
 0xa95   :  { %v1053_v12 = vpop.xlane.xlu2 %1052 }
 0xa96   :  { %v1065_v21 = vsub.f32 %v2252_v53, %v1053_v12  ;;  %v1691_v53 = vld [vmem:[%s2395_s2 + $0x28] sm:$0xff]  ;;  %v1714_v12 = vld [vmem:[%s2396_s3 + $0x38] sm:$0xff] }
 0xa97   :  { %1216 = vmatpush.msrb.mxu2 %v1691_v53 }
 0xa98   :  { %v1078_v48 = vmul.f32 1.442695, %v1065_v21  ;;  %v1711_v21 = vld [vmem:[%s2396_s3 + $0x20] sm:$0xff] }
 0xacc   :  { %v1092_v18 = vpop.xlane.xlu1 %1091 }
 0xacd   :  { %1828 = vrcp.f32 %v1092_v18  ;;  %v1692_v18 = vld [vmem:[%s2395_s2 + $0x30] sm:$0xff] }
 0xace   :  { %1309 = vmatpush.msra.mxu1 %v1692_v18  ;;  %v1722_v18 = vld [vmem:[%s2397_s4 + $0x58] sm:$0xff] }
 0xad3   :  { %v1829_v19 = vpop.eup %1828 }
 0xad4   :  { %v1118_v20 = vmul.f32 %v1829_v19, %v1825_v58  ;;  %v1038_v22 = vpop.xlane.xlu1 %1037  ;;  %v1095_v2 = vpop.xlane.xlu0 %1094  ;;  %v1693_v19 = vld [vmem:[%s2395_s2 + $0x38] sm:$0xff] }
 0xad5   :  { %v1060_v42 = vsub.f32 %v1028_v1, %v1038_v22  ;;  %1830 = vrcp.f32 %v1095_v2  ;;  %1369 = vmatpush.msrb.mxu3 %v1693_v19  ;;  %v1721_v19 = vld [vmem:[%s2397_s4 + $0x50] sm:$0xff] }
 0xad6   :  { %1696 = vmatmul.msk.f32.vlgmr.msrb.gmra.mxu1 %vm169_vm9, %v1118_v20 }
 0xad7   :  { %v1068_v45 = vmul.f32 1.442695, %v1060_v42 }
 0xad9   :  { %1832 = vpow2.f32 %v1068_v45 }
 0xadb   :  { %v1831_v25 = vpop.eup %1830 }
 0xadc   :  { %v1056_v26 = vpop.xlane.xlu1 %1055  ;;  %v1041_v0 = vpop.xlane.xlu0 %1040  ;;  %v1119_v27 = vmul.f32 %v1831_v25, %v1827_v4 }
 0xadd   :  { %v1066_v28 = vsub.f32 %v1034_v8, %v1056_v26  ;;  %v1061_v29 = vsub.f32 %v1029_v9, %v1041_v0 }
 0xade   :  { %1697 = vmatmul.msk.f32.gmra.mxu1 %vm169_vm9, %v1119_v27 }
 0xadf   :  { %v1833_v24 = vpop.eup %1832  ;;  %v1080_v30 = vmul.f32 1.442695, %v1066_v28  ;;  %v1070_v31 = vmul.f32 1.442695, %v1061_v29 }
 0xae0   :  { %v1084_v32 = vsel %vm169_vm9, %v1833_v24, 0.0 }
 0xae1   :  { %1834 = vpow2.f32 %v1080_v30  ;;  %1085 = vadd.xlane.f32.xlu0 %v1084_v32 }
 0xae2   :  { %1836 = vpow2.f32 %v1070_v31 }
 0xae4   :  { %v1059_v33 = vpop.xlane.xlu0 %1058  ;;  %v1050_v34 = vpop.xlane.xlu1 %1049 }
 0xae5   :  { %v1067_v35 = vsub.f32 %v1035_v14, %v1059_v33  ;;  %v1064_v39 = vsub.f32 %v1032_v13, %v1050_v34 }
 0xae7   :  { %v1835_v23 = vpop.eup %1834  ;;  %v1082_v36 = vmul.f32 1.442695, %v1067_v35  ;;  %v1076_v44 = vmul.f32 1.442695, %v1064_v39 }
 0xae8   :  { %v1837_v38 = vpop.eup %1836  ;;  %v1102_v40 = vsel %vm169_vm9, %v1835_v23, 0.0 }
 0xae9   :  { %1103 = vadd.xlane.f32.xlu0 %v1102_v40  ;;  %v1087_v43 = vsel %vm169_vm9, %v1837_v38, 0.0  ;;  %1838 = vpow2.f32 %v1082_v36 }
 0xaea   :  { %1088 = vadd.xlane.f32.xlu1 %v1087_v43  ;;  %1840 = vpow2.f32 %v1076_v44 }
 0xaeb   :  { %1842 = vpow2.f32 %v1078_v48 }
 0xaef   :  { %v1839_v46 = vpop.eup %1838 }
 0xaf0   :  { %v1105_v47 = vsel %vm169_vm9, %v1839_v46, 0.0  ;;  %v1841_v49 = vpop.eup %1840 }
 0xaf1   :  { %1106 = vadd.xlane.f32.xlu0 %v1105_v47  ;;  %v1096_v50 = vsel %vm169_vm9, %v1841_v49, 0.0  ;;  %v1843_v51 = vpop.eup %1842 }
 0xaf2   :  { %v1099_v62 = vsel %vm169_vm9, %v1843_v51, 0.0 }
 0xaf9   :  { %1097 = vadd.xlane.f32.xlu0 %v1096_v50 }
 0xb01   :  { %1100 = vadd.xlane.f32.xlu0 %v1099_v62 }
 0xb03   :  { %1761 = vrot.lane.b32.xlu1 %v2248_v52, %s1880_s14 }
 0xb53   :  { %v1189_v54 = vpop.f32.mrf.mxu1 }
 0xb54   :  { %v1086_v55 = vpop.xlane.xlu0 %1085  ;;  %1698 = vmatmul.msk.f32.vlgmr.msrb.gmra.mxu2 %vm137_vm8, %v1189_v54 }
 0xb55   :  { %1844 = vrcp.f32 %v1086_v55 }
 0xb5b   :  { %v1845_v56 = vpop.eup %1844  ;;  %v1192_v3 = vpop.f32.mrf.mxu1 }
 0xb5c   :  { %v1116_v57 = vmul.f32 %v1845_v56, %v1833_v24  ;;  %v1104_v58 = vpop.xlane.xlu0 %1103  ;;  %1699 = vmatmul.msk.f32.gmra.mxu2 %vm137_vm8, %v1192_v3 }
 0xb5d   :  { %v1089_v59 = vpop.xlane.xlu1 %1088 }
 0xb5e   :  { %1846 = vrcp.f32 %v1089_v59  ;;  %1694 = vmatmul.msk.f32.vlgmr.msrb.gmra.mxu0 %vm169_vm9, %v1116_v57 }
 0xb5f   :  { %1848 = vrcp.f32 %v1104_v58 }
 0xb64   :  { %v1847_v52 = vpop.eup %1846  ;;  %v1107_v60 = vpop.xlane.xlu0 %1106 }
 0xb65   :  { %v1117_v61 = vmul.f32 %v1847_v52, %v1837_v38  ;;  %v1849_v1 = vpop.eup %1848  ;;  %v1768_v52 = vld [vmem:[%s2391_s5 + $0x3] ss:$0 sm:$0xff] }
 0xb66   :  { %v1122_v9 = vmul.f32 %v1849_v1, %v1835_v23 }
 0xb67   :  { %1695 = vmatmul.msk.f32.gmra.mxu0 %vm169_vm9, %v1117_v61 }
 0xb6c   :  { %v1098_v63 = vpop.xlane.xlu0 %1097 }
 0xb6d   :  { %1850 = vrcp.f32 %v1098_v63 }
 0xb6e   :  { %1852 = vrcp.f32 %v1107_v60 }
 0xb73   :  { %v1851_v6 = vpop.eup %1850 }
 0xb74   :  { %v1101_v5 = vpop.xlane.xlu0 %1100  ;;  %v1120_v10 = vmul.f32 %v1851_v6, %v1841_v49  ;;  %v1853_v11 = vpop.eup %1852 }
 0xb75   :  { %v1762_v4 = vpop.permute.xlu1 %1761  ;;  %1854 = vrcp.f32 %v1101_v5  ;;  %v1123_v15 = vmul.f32 %v1853_v11, %v1839_v46  ;;  %v1713_v46 = vld [vmem:[%s2396_s3 + $0x30] sm:$0xff]  ;;  %v1726_v11 = vld [vmem:[%s2397_s4 + $0x78] sm:$0xff] }
 0xb76   :  { %v1763_v7 = vunpack.i.l.bf16 %v1762_v4  ;;  %v1764_v8 = vunpack.i.h.bf16 %v1762_v4  ;;  %1529 = vmatpush.msrb.mxu1 %v1726_v11 }
 0xb78   :  { %1279 = vmatpush.msra.mxu0 %v1763_v7  ;;  %1339 = vmatpush.msra.mxu2 %v1763_v7 }
 0xb7a   :  { %1280 = vmatpush.msra.mxu0 %v1764_v8  ;;  %1340 = vmatpush.msra.mxu2 %v1764_v8 }
 0xb7b   :  { %1702 = vmatmul.msk.f32.vlgmr.msra.gmra.mxu0 %vm169_vm9, %v1120_v10  ;;  %1706 = vmatmul.msk.f32.vlgmr.msra.gmra.mxu2 %vm169_vm9, %v1122_v9  ;;  %v1855_v13 = vpop.eup %1854 }
 0xb7c   :  { %v1121_v14 = vmul.f32 %v1855_v13, %v1843_v51  ;;  %1445 = vmatpush.msrb.mxu0 %v1714_v12  ;;  %v1725_v13 = vld [vmem:[%s2397_s4 + $0x70] sm:$0xff] }
 0xb7d   :  { %1530 = vmatpush.msrb.mxu1 %v1725_v13 }
 0xb7e   :  { %1446 = vmatpush.msrb.mxu0 %v1713_v46 }
 0xb83   :  { %1703 = vmatmul.msk.f32.gmra.mxu0 %vm169_vm9, %v1121_v14  ;;  %1707 = vmatmul.msk.f32.gmra.mxu2 %vm169_vm9, %v1123_v15  ;;  %v1724_v14 = vld [vmem:[%s2397_s4 + $0x68] sm:$0xff] }
 0xb84   :  { %1531 = vmatpush.msrb.mxu1 %v1724_v14 }
 0xb86   :  { %1532 = vmatpush.msrb.mxu1 %v1723_v17 }
 0xb88   :  { %1533 = vmatpush.msrb.mxu1 %v1722_v18 }
 0xb8a   :  { %1534 = vmatpush.msrb.mxu1 %v1721_v19 }
 0xbd7   :  { %v1218_v2 = vpop.f32.mrf.mxu2 }
 0xbdb   :  { %v1160_v20 = vpop.f32.mrf.mxu0 }
 0xbdc   :  { %1700 = vmatmul.msk.f32.vlgmr.msra.gmra.mxu3 %vm137_vm8, %v1160_v20  ;;  %v1720_v20 = vld [vmem:[%s2397_s4 + $0x48] sm:$0xff] }
 0xbdd   :  { %1535 = vmatpush.msrb.mxu1 %v1720_v20 }
 0xbdf   :  { %v1221_v42 = vpop.f32.mrf.mxu2 }
 0xbe4   :  { %v1163_v22 = vpop.f32.mrf.mxu0 }
 0xbe5   :  { %1701 = vmatmul.msk.f32.gmra.mxu3 %vm137_vm8, %v1163_v22 }
 0xbf8   :  { %v1282_v45 = vpop.f32.mrf.mxu0 }
 0xbf9   :  { %1704 = vmatmul.msk.f32.vlgmr.msra.gmra.mxu1 %vm137_vm8, %v1282_v45  ;;  %v1719_v45 = vld [vmem:[%s2397_s4 + $0x40] sm:$0xff] }
 0xbfa   :  { %1536 = vmatpush.msrb.mxu1 %v1719_v45 }
 0xbfe   :  { %v1342_v25 = vpop.f32.mrf.mxu2 }
 0xbff   :  { %1708 = vmatmul.msk.f32.vlgmr.msrb.gmra.mxu3 %vm137_vm8, %v1342_v25 }
 0xc00   :  { %v1285_v26 = vpop.f32.mrf.mxu0 }
 0xc01   :  { %1705 = vmatmul.msk.f32.gmra.mxu1 %vm137_vm8, %v1285_v26 }
 0xc06   :  { %v1345_v0 = vpop.f32.mrf.mxu2 }
 0xc07   :  { %1709 = vmatmul.msk.f32.gmra.mxu3 %vm137_vm8, %v1345_v0 }
 0xc5f   :  { %v1247_v27 = vpop.f32.mrf.mxu3 }
 0xc60   :  { %v1248_v24 = vadd.f32 %v1247_v27, %v1218_v2 }
 0xc68   :  { %v1250_v28 = vpop.f32.mrf.mxu3 }
 0xc69   :  { %v1251_v35 = vadd.f32 %v1250_v28, %v1221_v42 }
 0xc76   :  { %v1311_v29 = vpop.f32.mrf.mxu1 }
 0xc77   :  { %v1317_v30 = vadd.f32 %v1311_v29, %v1248_v24 }
 0xc7e   :  { %v1314_v34 = vpop.f32.mrf.mxu1 }
 0xc7f   :  { %v1318_v36 = vadd.f32 %v1314_v34, %v1251_v35 }
 0xc82   :  { %v1371_v31 = vpop.f32.mrf.mxu3 }
 0xc83   :  { %v1377_v32 = vadd.f32 %v1371_v31, %v1317_v30 }
 0xc85   :  { %v2301_v33 = vadd.f32 %v1377_v32, %v2160_v37 }
 0xc87   :  { %v1383_v23 = vmul.f32 %v2301_v33, %v2301_v33 }
 0xc89   :  { %v1385_v38 = vsel %vm41_vm0, %v1383_v23, 0.0 }
 0xc8a   :  { %1386 = vadd.xlane.f32.xlu1 %v1385_v38  ;;  %v1374_v39 = vpop.f32.mrf.mxu3 }
 0xc8b   :  { %v1378_v40 = vadd.f32 %v1374_v39, %v1318_v36 }
 0xc8d   :  { %v2307_v43 = vadd.f32 %v1378_v40, %v2166_v41  ;;  %v1712_v41 = vld [vmem:[%s2396_s3 + $0x28] sm:$0xff] }
 0xc8e   :  { %1447 = vmatpush.msrb.mxu0 %v1712_v41 }
 0xc8f   :  { %v1384_v44 = vmul.f32 %v2307_v43, %v2307_v43 }
 0xc90   :  { %1448 = vmatpush.msrb.mxu0 %v1711_v21 }
 0xc91   :  { %v1388_v37 = vsel %vm41_vm0, %v1384_v44, 0.0 }
 0xc92   :  { %1389 = vadd.xlane.f32.xlu0 %v1388_v37 }
 0xcfd   :  { %v1387_v47 = vpop.xlane.xlu1 %1386 }
 0xcfe   :  { %v1391_v48 = vmul.f32 %v1387_v47, %v1959_v16 }
 0xd00   :  { %v1393_v49 = vadd.f32 1e-05, %v1391_v48 }
 0xd02   :  { %1856 = vrsqrt.f32 %v1393_v49  ;;  %vm1401_vm9 = vweird.f32 %v1393_v49 }
 0xd05   :  { %v1390_v50 = vpop.xlane.xlu0 %1389 }
 0xd06   :  { %v1392_v51 = vmul.f32 %v1390_v50, %v1959_v16 }
 0xd08   :  { %v1857_v62 = vpop.eup %1856  ;;  %v1394_v53 = vadd.f32 1e-05, %v1392_v51 }
 0xd09   :  { %v1396_v54 = vmul.f32 %v1857_v62, %v1393_v49  ;;  %vm1402_vm8 = vweird.f32 %v1857_v62 }
 0xd0a   :  { %1858 = vrsqrt.f32 %v1394_v53  ;;  %vm1403_vm3 = vmor %vm1401_vm9, %vm1402_vm8  ;;  %vm1411_vm5 = vweird.f32 %v1394_v53 }
 0xd0b   :  { %v1397_v55 = vmul.f32 %v1857_v62, %v1396_v54 }
 0xd0d   :  { %v1398_v56 = vmul.f32 0.5, %v1397_v55 }
 0xd0f   :  { %v1399_v3 = vsub.f32 1.5, %v1398_v56 }
 0xd10   :  { %v1859_v57 = vpop.eup %1858 }
 0xd11   :  { %v1400_v58 = vmul.f32 %v1857_v62, %v1399_v3  ;;  %v1406_v59 = vmul.f32 %v1859_v57, %v1394_v53  ;;  %vm1412_vm4 = vweird.f32 %v1859_v57 }
 0xd12   :  { %vm1413_vm6 = vmor %vm1411_vm5, %vm1412_vm4 }
 0xd13   :  { %v1404_v60 = vsel %vm1403_vm3, %v1857_v62, %v1400_v58  ;;  %v1407_v61 = vmul.f32 %v1859_v57, %v1406_v59 }
 0xd14   :  { %v1415_v63 = vmul.f32 %v1404_v60, %v2301_v33  ;;  %v1588_v60 = vld [vmem:[%s2398_s6 + $0x8] sm:$0xff] }
 0xd15   :  { %v1408_v1 = vmul.f32 0.5, %v1407_v61 }
 0xd16   :  { %v1420_v4 = vmul.f32 %v1768_v52, %v1415_v63 }
 0xd17   :  { %v1409_v5 = vsub.f32 1.5, %v1408_v1 }
 0xd18   :  { %1715 = vmatmul.msk.f32.vlgmr.msrb.gmra.mxu0 %vm41_vm0, %v1420_v4 }
 0xd19   :  { %v1410_v6 = vmul.f32 %v1859_v57, %v1409_v5 }
 0xd1b   :  { %v1414_v7 = vsel %vm1413_vm6, %v1859_v57, %v1410_v6 }
 0xd1c   :  { %v1416_v8 = vmul.f32 %v1414_v7, %v2307_v43 }
 0xd1e   :  { %v1421_v9 = vmul.f32 %v1768_v52, %v1416_v8  ;;  %v1590_v52 = vld [vmem:[%s2398_s6 + $0x18] sm:$0xff] }
 0xd1f   :  { %1609 = vmatpush.msrb.mxu2 %v1590_v52 }
 0xd20   :  { %1716 = vmatmul.msk.f32.gmra.mxu0 %vm41_vm0, %v1421_v9 }
 0xd95   :  { %v1450_v10 = vpop.f32.mrf.mxu0 }
 0xd96   :  { %1498 = vrot.lane.b32.xlu2 %v1450_v10, %s1873_s24  ;;  %v1717_v22 = vmul.f32 -1.442695, %v1450_v10 }
 0xd98   :  { %1860 = vpow2.f32 %v1717_v22 }
 0xd9d   :  { %v1453_v15 = vpop.f32.mrf.mxu0 }
 0xd9e   :  { %1500 = vrot.lane.b32.xlu0 %v1453_v15, %s1873_s24  ;;  %v1861_v2 = vpop.eup %1860  ;;  %v1718_v27 = vmul.f32 -1.442695, %v1453_v15 }
 0xd9f   :  { %v1462_v42 = vadd.f32 1.0, %v1861_v2 }
 0xda1   :  { %1862 = vrcp.f32 %v1462_v42  ;;  %v1475_v24 = vand.u32 2147483648, %v1462_v42  ;;  %vm1469_vm11 = vweird.f32 %v1462_v42  ;;  %v1473_v30 = vand.u32 2147483647, %v1462_v42 }
 0xda2   :  { %1864 = vpow2.f32 %v1718_v27 }
 0xda3   :  { %v1476_v34 = vor.u32 1.1754944e-38, %v1475_v24  ;;  %vm1474_vm13 = vcmp.eq.f32.partialorder %v1473_v30, 8.507059e+37 }
 0xda7   :  { %v1863_v25 = vpop.eup %1862 }
 0xda8   :  { %v1465_v26 = vmul.f32 %v1863_v25, %v1462_v42  ;;  %vm1470_vm10 = vweird.f32 %v1863_v25  ;;  %v1865_v31 = vpop.eup %1864 }
 0xda9   :  { %vm1471_vm12 = vmor %vm1469_vm11, %vm1470_vm10  ;;  %v1463_v35 = vadd.f32 1.0, %v1865_v31 }
 0xdaa   :  { %v1466_v0 = vsub.f32 1.0, %v1465_v26 }
 0xdab   :  { %1866 = vrcp.f32 %v1463_v35  ;;  %v1490_v41 = vand.u32 2147483648, %v1463_v35  ;;  %vm1484_vm15 = vweird.f32 %v1463_v35  ;;  %v1488_v21 = vand.u32 2147483647, %v1463_v35 }
 0xdac   :  { %v1467_v28 = vmul.f32 %v1863_v25, %v1466_v0 }
 0xdad   :  { %v1491_v48 = vor.u32 1.1754944e-38, %v1490_v41  ;;  %vm1489_vm2 = vcmp.eq.f32.partialorder %v1488_v21, 8.507059e+37 }
 0xdae   :  { %v1468_v29 = vadd.f32 %v1863_v25, %v1467_v28 }
 0xdb0   :  { %v1472_v32 = vsel %vm1471_vm12, %v1863_v25, %v1468_v29 }
 0xdb1   :  { %v1477_v23 = vsel %vm1474_vm13, %v1476_v34, %v1472_v32  ;;  %v1867_v40 = vpop.eup %1866 }
 0xdb2   :  { %v1494_v36 = vmul.f32 %v1477_v23, %v1450_v10  ;;  %v1480_v44 = vmul.f32 %v1867_v40, %v1463_v35  ;;  %vm1485_vm14 = vweird.f32 %v1867_v40  ;;  %v1769_v10 = vld [vmem:[%s2391_s5 + $0x4] ss:$0 sm:$0xff] }
 0xdb3   :  { %vm1486_vm1 = vmor %vm1484_vm15, %vm1485_vm14 }
 0xdb4   :  { %v1481_v37 = vsub.f32 1.0, %v1480_v44 }
 0xdb6   :  { %v1482_v12 = vmul.f32 %v1867_v40, %v1481_v37 }
 0xdb8   :  { %v1483_v46 = vadd.f32 %v1867_v40, %v1482_v12 }
 0xdba   :  { %v1487_v47 = vsel %vm1486_vm1, %v1867_v40, %v1483_v46 }
 0xdbb   :  { %v1492_v49 = vsel %vm1489_vm2, %v1491_v48, %v1487_v47 }
 0xdbc   :  { %v1495_v50 = vmul.f32 %v1492_v49, %v1453_v15 }
 0xdf0   :  { %v1499_v38 = vpop.permute.xlu2 %1498 }
 0xdf1   :  { %v1504_v39 = vmul.f32 %v1499_v38, %v1494_v36 }
 0xdf3   :  { %1727 = vmatmul.msk.f32.vlgmr.msrb.gmra.mxu1 %vm763_vm7, %v1504_v39 }
 0xe10   :  { %v1501_v51 = vpop.permute.xlu0 %1500 }
 0xe11   :  { %v1505_v62 = vmul.f32 %v1501_v51, %v1495_v50 }
 0xe13   :  { %1728 = vmatmul.msk.f32.gmra.mxu1 %vm763_vm7, %v1505_v62 }
 0xe70   :  { %v1538_v53 = vpop.f32.mrf.mxu1 }
 0xe71   :  { %v1544_v54 = vadd.f32 %v1538_v53, %v2301_v33  ;;  %v1589_v33 = vld [vmem:[%s2398_s6 + $0x10] sm:$0xff] }
 0xe72   :  { %1610 = vmatpush.msrb.mxu2 %v1589_v33 }
 0xe73   :  { %v1548_v55 = vmul.f32 %v1544_v54, %v1544_v54 }
 0xe74   :  { %1611 = vmatpush.msrb.mxu2 %v1588_v60 }
 0xe75   :  { %v1550_v56 = vsel %vm41_vm0, %v1548_v55, 0.0 }
 0xe76   :  { %1551 = vadd.xlane.f32.xlu2 %v1550_v56 }
 0xe90   :  { %v1541_v3 = vpop.f32.mrf.mxu1 }
 0xe91   :  { %v1545_v57 = vadd.f32 %v1541_v3, %v2307_v43  ;;  %v1587_v43 = vld [vmem:[%s2398_s6] sm:$0xff] }
 0xe92   :  { %1612 = vmatpush.msrb.mxu2 %v1587_v43 }
 0xe93   :  { %v1549_v58 = vmul.f32 %v1545_v57, %v1545_v57 }
 0xe95   :  { %v1553_v59 = vsel %vm41_vm0, %v1549_v58, 0.0 }
 0xe96   :  { %1554 = vadd.xlane.f32.xlu0 %v1553_v59 }
 0xee9   :  { %v1552_v61 = vpop.xlane.xlu2 %1551 }
 0xeea   :  { %v1556_v63 = vmul.f32 %v1552_v61, %v1959_v16 }
 0xeec   :  { %v1558_v1 = vadd.f32 1e-05, %v1556_v63 }
 0xeee   :  { %1868 = vrsqrt.f32 %v1558_v1  ;;  %vm1566_vm8 = vweird.f32 %v1558_v1 }
 0xef4   :  { %v1869_v4 = vpop.eup %1868 }
 0xef5   :  { %v1561_v5 = vmul.f32 %v1869_v4, %v1558_v1  ;;  %vm1567_vm7 = vweird.f32 %v1869_v4 }
 0xef6   :  { %vm1568_vm9 = vmor %vm1566_vm8, %vm1567_vm7 }
 0xef7   :  { %v1562_v6 = vmul.f32 %v1869_v4, %v1561_v5 }
 0xef9   :  { %v1563_v7 = vmul.f32 0.5, %v1562_v6 }
 0xefb   :  { %v1564_v8 = vsub.f32 1.5, %v1563_v7 }
 0xefd   :  { %v1565_v9 = vmul.f32 %v1869_v4, %v1564_v8 }
 0xeff   :  { %v1569_v11 = vsel %vm1568_vm9, %v1869_v4, %v1565_v9 }
 0xf00   :  { %v1580_v13 = vmul.f32 %v1569_v11, %v1544_v54 }
 0xf02   :  { %v1585_v14 = vmul.f32 %v1769_v10, %v1580_v13 }
 0xf04   :  { %1730 = vmatmul.msk.f32.vlgmr.msrb.gmra.mxu2 %vm41_vm0, %v1585_v14 }
 0xf09   :  { %v1555_v15 = vpop.xlane.xlu0 %1554 }
 0xf0a   :  { %v1557_v17 = vmul.f32 %v1555_v15, %v1959_v16 }
 0xf0c   :  { %v1559_v18 = vadd.f32 1e-05, %v1557_v17 }
 0xf0e   :  { %1870 = vrsqrt.f32 %v1559_v18  ;;  %vm1576_vm4 = vweird.f32 %v1559_v18 }
 0xf14   :  { %v1871_v19 = vpop.eup %1870 }
 0xf15   :  { %v1571_v20 = vmul.f32 %v1871_v19, %v1559_v18  ;;  %vm1577_vm3 = vweird.f32 %v1871_v19 }
 0xf16   :  { %vm1578_vm5 = vmor %vm1576_vm4, %vm1577_vm3 }
 0xf17   :  { %v1572_v22 = vmul.f32 %v1871_v19, %v1571_v20 }
 0xf19   :  { %v1573_v2 = vmul.f32 0.5, %v1572_v22 }
 0xf1b   :  { %v1574_v42 = vsub.f32 1.5, %v1573_v2 }
 0xf1d   :  { %v1575_v45 = vmul.f32 %v1871_v19, %v1574_v42 }
 0xf1f   :  { %v1579_v25 = vsel %vm1578_vm5, %v1871_v19, %v1575_v45 }
 0xf20   :  { %v1581_v26 = vmul.f32 %v1579_v25, %v1545_v57 }
 0xf22   :  { %v1586_v0 = vmul.f32 %v1769_v10, %v1581_v26 }
 0xf24   :  { %1731 = vmatmul.msk.f32.gmra.mxu2 %vm41_vm0, %v1586_v0 }
 0xf87   :  { %v1614_v27 = vpop.f32.mrf.mxu2 }
 0xf88   :  { %1620 = vst [vmem:[%s2399_s9] sm:$0xff] %v1614_v27 }
 0xfa7   :  { %v1617_v16 = vpop.f32.mrf.mxu2 }
 0xfa8   :  { %1621 = vst [vmem:[%s2399_s9 + $0x8] sm:$0xff] %v1617_v16 }

</bundles_post_ra>
